<compile_context>
chip_gen: v7x
topology: tpu7x:2x2x1
jax: 0.10.0
libtpu: 0.0.40
codegen_flags: <defaults>
</compile_context>

<pallas_src>
import functools
import math

import jax
import jax.numpy as jnp
from jax.experimental import pallas as pl
from jax.experimental.pallas import tpu as pltpu


def _layer_norm(x, g, b, eps=1e-5):
    # nn.LayerNorm semantics: biased variance, eps inside sqrt.
    mean = jnp.mean(x, axis=-1, keepdims=True)
    var = jnp.mean(jnp.square(x - mean), axis=-1, keepdims=True)
    return (x - mean) * jax.lax.rsqrt(var + eps) * g + b


def _encoder_stack_kernel(x_ref,
                          wqkv_ref, bqkv_ref, wo_ref, bo_ref,
                          w1_ref, b1_ref, w2_ref, b2_ref,
                          ln1g_ref, ln1b_ref, ln2g_ref, ln2b_ref,
                          o_ref, *, n_heads):
    layer = pl.program_id(1)

    # First layer for this batch tile: seed the resident activation block from x.
    @pl.when(layer == 0)
    def _():
        o_ref[...] = x_ref[...]

    Bt, S, D = o_ref.shape
    dh = D // n_heads
    scale = 1.0 / math.sqrt(dh)

    x = o_ref[...].astype(jnp.float32)                            # (Bt, S, D)

    # ---- sublayer 1: pre-norm multi-head self-attention + residual ----------
    ln1 = _layer_norm(x, ln1g_ref[0], ln1b_ref[0])
    tok = ln1.reshape(Bt * S, D).astype(jnp.bfloat16)
    # Fused full-width QKV projection: (tokens, D) @ (D, 3D), fp32 accumulate.
    qkv = jnp.dot(tok, wqkv_ref[0],
                  preferred_element_type=jnp.float32) + bqkv_ref[0]
    qkv = qkv.reshape(Bt, S, 3 * D)

    ctx_heads = []
    for h in range(n_heads):                                      # static, small
        q = qkv[:, :, h * dh:(h + 1) * dh].astype(jnp.bfloat16)
        k = qkv[:, :, D + h * dh:D + (h + 1) * dh].astype(jnp.bfloat16)
        v = qkv[:, :, 2 * D + h * dh:2 * D + (h + 1) * dh].astype(jnp.bfloat16)
        # contract last dims directly (no k.T), batched over the batch tile
        s = jnp.einsum("bqd,bkd->bqk", q, k,
                       preferred_element_type=jnp.float32) * scale
        s = s - jnp.max(s, axis=-1, keepdims=True)
        p = jnp.exp(s)
        p = p * pl.reciprocal(jnp.sum(p, axis=-1, keepdims=True), approx=True)
        ctx_heads.append(jnp.einsum("bqk,bkd->bqd", p.astype(jnp.bfloat16), v,
                                    preferred_element_type=jnp.float32))
    ctx = jnp.concatenate(ctx_heads, axis=-1)                     # (Bt, S, D)
    # Single full-width output projection over concatenated heads.
    attn = jnp.dot(ctx.reshape(Bt * S, D).astype(jnp.bfloat16), wo_ref[0],
                   preferred_element_type=jnp.float32) + bo_ref[0]
    x1 = x + attn.reshape(Bt, S, D)                               # dropout == identity

    # ---- sublayer 2: pre-norm position-wise feed-forward + residual ---------
    ln2 = _layer_norm(x1, ln2g_ref[0], ln2b_ref[0])
    hid = jnp.dot(ln2.reshape(Bt * S, D).astype(jnp.bfloat16), w1_ref[0],
                  preferred_element_type=jnp.float32) + b1_ref[0]
    hid = jnp.maximum(hid, 0.0).astype(jnp.bfloat16)              # ReLU
    ff = jnp.dot(hid, w2_ref[0],
                 preferred_element_type=jnp.float32) + b2_ref[0]

    o_ref[...] = (x1 + ff.reshape(Bt, S, D)).astype(o_ref.dtype)


def encoder_forward(x_sbd, params, *, n_heads, block_b=None):
    """Matches Encoder.forward: transpose(0,1) -> n layers -> transpose(0,1)."""
    S, B, D = x_sbd.shape
    L = params["wqkv"].shape[0]
    assert params["wqkv"].shape[2] == 3 * D
    assert D % n_heads == 0

    Bt = B if block_b is None else block_b
    assert B % Bt == 0

    x_bsd = jnp.transpose(x_sbd, (1, 0, 2))                       # (B, S, D)

    weight_order = ["wqkv", "bqkv", "wo", "bo", "w1", "b1", "w2", "b2",
                    "ln1_g", "ln1_b", "ln2_g", "ln2_b"]
    weights = [params[name] for name in weight_order]

    def w_spec(arr):
        # stacked per-layer weights: (L, a, b); select layer l each inner step
        return pl.BlockSpec((1,) + arr.shape[1:], lambda b, l: (l, 0, 0))

    out = pl.pallas_call(
        functools.partial(_encoder_stack_kernel, n_heads=n_heads),
        out_shape=jax.ShapeDtypeStruct((B, S, D), jnp.float32),
        grid=(B // Bt, L),
        in_specs=[pl.BlockSpec((Bt, S, D), lambda b, l: (b, 0, 0))]
                 + [w_spec(w) for w in weights],
        out_specs=pl.BlockSpec((Bt, S, D), lambda b, l: (b, 0, 0)),
        compiler_params=pltpu.CompilerParams(
            dimension_semantics=("parallel", "arbitrary"),
            vmem_limit_bytes=32 * 1024 * 1024),
    )(x_bsd, *weights)

    return jnp.transpose(out, (1, 0, 2))                          # back to (S, B, D)


def init_params(key, n_layers, dim_model, dim_ff, h):
    assert dim_model % h == 0
    L = n_layers
    ks = jax.random.split(key, 8)

    def w(k, shape, scale=0.02):
        return scale * jax.random.normal(k, shape, dtype=jnp.float32)

    return dict(
        # fused Q/K/V projection: columns [0:D]=Q, [D:2D]=K, [2D:3D]=V
        wqkv=w(ks[0], (L, dim_model, 3 * dim_model)).astype(jnp.bfloat16),
        bqkv=w(ks[1], (L, 1, 3 * dim_model)),
        # concat-heads output projection
        wo=w(ks[2], (L, dim_model, dim_model)).astype(jnp.bfloat16),
        bo=w(ks[3], (L, 1, dim_model)),
        # feed-forward
        w1=w(ks[4], (L, dim_model, dim_ff)).astype(jnp.bfloat16),
        b1=w(ks[5], (L, 1, dim_ff)),
        w2=w(ks[6], (L, dim_ff, dim_model)).astype(jnp.bfloat16),
        b2=w(ks[7], (L, 1, dim_model)),
        # layer norms (fp32)
        ln1_g=jnp.ones((L, 1, dim_model), jnp.float32),
        ln1_b=jnp.zeros((L, 1, dim_model), jnp.float32),
        ln2_g=jnp.ones((L, 1, dim_model), jnp.float32),
        ln2_b=jnp.zeros((L, 1, dim_model), jnp.float32),
    )


if __name__ == "__main__":
    # Encoder(dim_model=256, dim_ff=512, h=2, prob_dropout=0.0, n=2)
    # (small but lane-aligned: D, F multiples of 128; d_head = 128)
    S, B, D, F, H, N = 16, 4, 256, 512, 2, 2

    key = jax.random.PRNGKey(0)
    kx, kp = jax.random.split(key)
    x = jax.random.normal(kx, (S, B, D), dtype=jnp.float32)       # seq-first input
    params = init_params(kp, N, D, F, H)

    out = encoder_forward(x, params, n_heads=H, block_b=2)
    out = jax.block_until_ready(out)
    assert out.shape == (S, B, D)
    assert bool(jnp.all(jnp.isfinite(out)))
    print("KERNEL_OK")
</pallas_src>

<mosaic_0001>
module attributes {stable_mosaic.version = 11 : i64} {
  func.func @_encoder_stack_kernel(%arg0: i32, %arg1: i32, %arg2: memref<2x16x256xf32, #tpu.memory_space<vmem>>, %arg3: memref<1x256x768xbf16, #tpu.memory_space<vmem>>, %arg4: memref<1x1x768xf32, #tpu.memory_space<vmem>>, %arg5: memref<1x256x256xbf16, #tpu.memory_space<vmem>>, %arg6: memref<1x1x256xf32, #tpu.memory_space<vmem>>, %arg7: memref<1x256x512xbf16, #tpu.memory_space<vmem>>, %arg8: memref<1x1x512xf32, #tpu.memory_space<vmem>>, %arg9: memref<1x512x256xbf16, #tpu.memory_space<vmem>>, %arg10: memref<1x1x256xf32, #tpu.memory_space<vmem>>, %arg11: memref<1x1x256xf32, #tpu.memory_space<vmem>>, %arg12: memref<1x1x256xf32, #tpu.memory_space<vmem>>, %arg13: memref<1x1x256xf32, #tpu.memory_space<vmem>>, %arg14: memref<1x1x256xf32, #tpu.memory_space<vmem>>, %arg15: memref<2x16x256xf32, #tpu.memory_space<vmem>>) attributes {dimension_semantics = [#tpu.dimension_semantics<parallel>, #tpu.dimension_semantics<arbitrary>], iteration_bounds = array<i64: 2, 2>, scalar_prefetch = 0 : i64, scratch_operands = 0 : i64, tpu.core_type = #tpu.core_type<tc>, window_params = [{transform_indices = @transform_0, window_bounds = array<i64: 2, 16, 256>}, {transform_indices = @transform_1, window_bounds = array<i64: 1, 256, 768>}, {transform_indices = @transform_2, window_bounds = array<i64: 1, 1, 768>}, {transform_indices = @transform_3, window_bounds = array<i64: 1, 256, 256>}, {transform_indices = @transform_4, window_bounds = array<i64: 1, 1, 256>}, {transform_indices = @transform_5, window_bounds = array<i64: 1, 256, 512>}, {transform_indices = @transform_6, window_bounds = array<i64: 1, 1, 512>}, {transform_indices = @transform_7, window_bounds = array<i64: 1, 512, 256>}, {transform_indices = @transform_8, window_bounds = array<i64: 1, 1, 256>}, {transform_indices = @transform_9, window_bounds = array<i64: 1, 1, 256>}, {transform_indices = @transform_10, window_bounds = array<i64: 1, 1, 256>}, {transform_indices = @transform_11, window_bounds = array<i64: 1, 1, 256>}, {transform_indices = @transform_12, window_bounds = array<i64: 1, 1, 256>}, {transform_indices = @transform_13, window_bounds = array<i64: 2, 16, 256>}]} {
    %c0_i32 = arith.constant 0 : i32
    %0 = arith.cmpi eq, %arg1, %c0_i32 : i32
    %1 = arith.extui %0 : i1 to i32
    %c0_i32_0 = arith.constant 0 : i32
    %2 = arith.cmpi ne, %1, %c0_i32_0 : i32
    scf.if %2 {
      %c0_66 = arith.constant 0 : index
      %c0_67 = arith.constant 0 : index
      %c0_68 = arith.constant 0 : index
      %146 = vector.load %arg2[%c0_66, %c0_67, %c0_68] : memref<2x16x256xf32, #tpu.memory_space<vmem>>, vector<2x16x256xf32>
      %c0_69 = arith.constant 0 : index
      %c0_70 = arith.constant 0 : index
      %c0_71 = arith.constant 0 : index
      %147 = vector.load %arg15[%c0_69, %c0_70, %c0_71] : memref<2x16x256xf32, #tpu.memory_space<vmem>>, vector<2x16x256xf32>
      tpu.vector_store %arg15[%c0_69, %c0_70, %c0_71], %146 {strides = array<i32>} : memref<2x16x256xf32, #tpu.memory_space<vmem>>, vector<2x16x256xf32>,
    } else {
    }
    %c0 = arith.constant 0 : index
    %c0_1 = arith.constant 0 : index
    %c0_2 = arith.constant 0 : index
    %3 = vector.load %arg15[%c0, %c0_1, %c0_2] : memref<2x16x256xf32, #tpu.memory_space<vmem>>, vector<2x16x256xf32>
    %c0_3 = arith.constant 0 : index
    %c0_4 = arith.constant 0 : index
    %c0_5 = arith.constant 0 : index
    %4 = vector.load %arg11[%c0_3, %c0_4, %c0_5] : memref<1x1x256xf32, #tpu.memory_space<vmem>>, vector<1x1x256xf32>
    %5 = vector.shape_cast %4 : vector<1x1x256xf32> to vector<1x256xf32>
    %c0_6 = arith.constant 0 : index
    %c0_7 = arith.constant 0 : index
    %c0_8 = arith.constant 0 : index
    %6 = vector.load %arg12[%c0_6, %c0_7, %c0_8] : memref<1x1x256xf32, #tpu.memory_space<vmem>>, vector<1x1x256xf32>
    %7 = vector.shape_cast %6 : vector<1x1x256xf32> to vector<1x256xf32>
    %cst = arith.constant dense<0.000000e+00> : vector<2x16xf32>
    %8 = vector.multi_reduction <add>, %3, %cst [2] : vector<2x16x256xf32> to vector<2x16xf32>
    %9 = vector.shape_cast %8 : vector<2x16xf32> to vector<2x16x1xf32>
    %cst_9 = arith.constant 2.560000e+02 : f32
    %10 = vector.broadcast %cst_9 : f32 to vector<2x16x1xf32>
    %11 = arith.divf %9, %10 : vector<2x16x1xf32>
    %12 = vector.broadcast %11 : vector<2x16x1xf32> to vector<2x16x256xf32>
    %13 = arith.subf %3, %12 : vector<2x16x256xf32>
    %14 = arith.mulf %13, %13 : vector<2x16x256xf32>
    %cst_10 = arith.constant dense<0.000000e+00> : vector<2x16xf32>
    %15 = vector.multi_reduction <add>, %14, %cst_10 [2] : vector<2x16x256xf32> to vector<2x16xf32>
    %16 = vector.shape_cast %15 : vector<2x16xf32> to vector<2x16x1xf32>
    %cst_11 = arith.constant 2.560000e+02 : f32
    %17 = vector.broadcast %cst_11 : f32 to vector<2x16x1xf32>
    %18 = arith.divf %16, %17 : vector<2x16x1xf32>
    %19 = vector.broadcast %11 : vector<2x16x1xf32> to vector<2x16x256xf32>
    %20 = arith.subf %3, %19 : vector<2x16x256xf32>
    %cst_12 = arith.constant 9.99999974E-6 : f32
    %21 = vector.broadcast %cst_12 : f32 to vector<2x16x1xf32>
    %22 = arith.addf %18, %21 : vector<2x16x1xf32>
    %23 = math.rsqrt %22 : vector<2x16x1xf32>
    %24 = vector.broadcast %23 : vector<2x16x1xf32> to vector<2x16x256xf32>
    %25 = arith.mulf %20, %24 : vector<2x16x256xf32>
    %26 = vector.shape_cast %5 : vector<1x256xf32> to vector<1x1x256xf32>
    %27 = vector.broadcast %26 : vector<1x1x256xf32> to vector<2x16x256xf32>
    %28 = arith.mulf %25, %27 : vector<2x16x256xf32>
    %29 = vector.shape_cast %7 : vector<1x256xf32> to vector<1x1x256xf32>
    %30 = vector.broadcast %29 : vector<1x1x256xf32> to vector<2x16x256xf32>
    %31 = arith.addf %28, %30 : vector<2x16x256xf32>
    %32 = vector.shape_cast %31 : vector<2x16x256xf32> to vector<32x256xf32>
    %33 = arith.truncf %32 : vector<32x256xf32> to vector<32x256xbf16>
    %c0_13 = arith.constant 0 : index
    %c0_14 = arith.constant 0 : index
    %c0_15 = arith.constant 0 : index
    %34 = vector.load %arg3[%c0_13, %c0_14, %c0_15] : memref<1x256x768xbf16, #tpu.memory_space<vmem>>, vector<1x256x768xbf16>
    %35 = vector.shape_cast %34 : vector<1x256x768xbf16> to vector<256x768xbf16>
    %cst_16 = arith.constant dense<0.000000e+00> : vector<32x768xf32>
    %36 = tpu.matmul %33, %35, %cst_16 {dimension_numbers = #tpu.dot_dimension_numbers<[1], [0], [0], [1], [0, 0, 1, 1], [], []>} : vector<32x256xbf16>, vector<256x768xbf16>, vector<32x768xf32> -> vector<32x768xf32>
    %c0_17 = arith.constant 0 : index
    %c0_18 = arith.constant 0 : index
    %c0_19 = arith.constant 0 : index
    %37 = vector.load %arg4[%c0_17, %c0_18, %c0_19] : memref<1x1x768xf32, #tpu.memory_space<vmem>>, vector<1x1x768xf32>
    %38 = vector.shape_cast %37 : vector<1x1x768xf32> to vector<1x768xf32>
    %39 = vector.broadcast %38 : vector<1x768xf32> to vector<32x768xf32>
    %40 = arith.addf %36, %39 : vector<32x768xf32>
    %41 = vector.shape_cast %40 : vector<32x768xf32> to vector<2x16x768xf32>
    %42 = vector.extract_strided_slice %41 {offsets = [0, 0, 0], sizes = [2, 16, 128], strides = [1, 1, 1]} : vector<2x16x768xf32> to vector<2x16x128xf32>
    %43 = arith.truncf %42 : vector<2x16x128xf32> to vector<2x16x128xbf16>
    %44 = vector.extract_strided_slice %41 {offsets = [0, 0, 256], sizes = [2, 16, 128], strides = [1, 1, 1]} : vector<2x16x768xf32> to vector<2x16x128xf32>
    %45 = arith.truncf %44 : vector<2x16x128xf32> to vector<2x16x128xbf16>
    %46 = vector.extract_strided_slice %41 {offsets = [0, 0, 512], sizes = [2, 16, 128], strides = [1, 1, 1]} : vector<2x16x768xf32> to vector<2x16x128xf32>
    %47 = arith.truncf %46 : vector<2x16x128xf32> to vector<2x16x128xbf16>
    "tpu.trace_start"() <{level = 10 : i32, message = "bqd,bkd->bqk"}> : () -> ()
    %cst_20 = arith.constant dense<0.000000e+00> : vector<2x16x16xf32>
    %48 = tpu.matmul %43, %45, %cst_20 {dimension_numbers = #tpu.dot_dimension_numbers<[2], [2], [1], [1], [0, 0, 0, 1, 1, 1], [0], [0]>} : vector<2x16x128xbf16>, vector<2x16x128xbf16>, vector<2x16x16xf32> -> vector<2x16x16xf32>
    "tpu.trace_stop"() : () -> ()
    %cst_21 = arith.constant 0.0883883461 : f32
    %49 = vector.broadcast %cst_21 : f32 to vector<2x16x16xf32>
    %50 = arith.mulf %48, %49 : vector<2x16x16xf32>
    %cst_22 = arith.constant dense<0xFF800000> : vector<2x16xf32>
    %51 = vector.multi_reduction <maximumf>, %50, %cst_22 [2] : vector<2x16x16xf32> to vector<2x16xf32>
    %52 = vector.shape_cast %51 : vector<2x16xf32> to vector<2x16x1xf32>
    %53 = vector.broadcast %52 : vector<2x16x1xf32> to vector<2x16x16xf32>
    %54 = arith.subf %50, %53 : vector<2x16x16xf32>
    %55 = math.exp %54 : vector<2x16x16xf32>
    %cst_23 = arith.constant dense<0.000000e+00> : vector<2x16xf32>
    %56 = vector.multi_reduction <add>, %55, %cst_23 [2] : vector<2x16x16xf32> to vector<2x16xf32>
    %57 = vector.shape_cast %56 : vector<2x16xf32> to vector<2x16x1xf32>
    %58 = tpu.reciprocal %57 {approx = true} : vector<2x16x1xf32> -> vector<2x16x1xf32>
    %59 = vector.broadcast %58 : vector<2x16x1xf32> to vector<2x16x16xf32>
    %60 = arith.mulf %55, %59 : vector<2x16x16xf32>
    %61 = arith.truncf %60 : vector<2x16x16xf32> to vector<2x16x16xbf16>
    "tpu.trace_start"() <{level = 10 : i32, message = "bqk,bkd->bqd"}> : () -> ()
    %cst_24 = arith.constant dense<0.000000e+00> : vector<2x16x128xf32>
    %62 = tpu.matmul %61, %47, %cst_24 {dimension_numbers = #tpu.dot_dimension_numbers<[2], [1], [1], [2], [0, 0, 0, 1, 1, 2], [0], [0]>} : vector<2x16x16xbf16>, vector<2x16x128xbf16>, vector<2x16x128xf32> -> vector<2x16x128xf32>
    "tpu.trace_stop"() : () -> ()
    %63 = vector.extract_strided_slice %41 {offsets = [0, 0, 128], sizes = [2, 16, 128], strides = [1, 1, 1]} : vector<2x16x768xf32> to vector<2x16x128xf32>
    %64 = arith.truncf %63 : vector<2x16x128xf32> to vector<2x16x128xbf16>
    %65 = vector.extract_strided_slice %41 {offsets = [0, 0, 384], sizes = [2, 16, 128], strides = [1, 1, 1]} : vector<2x16x768xf32> to vector<2x16x128xf32>
    %66 = arith.truncf %65 : vector<2x16x128xf32> to vector<2x16x128xbf16>
    %67 = vector.extract_strided_slice %41 {offsets = [0, 0, 640], sizes = [2, 16, 128], strides = [1, 1, 1]} : vector<2x16x768xf32> to vector<2x16x128xf32>
    %68 = arith.truncf %67 : vector<2x16x128xf32> to vector<2x16x128xbf16>
    "tpu.trace_start"() <{level = 10 : i32, message = "bqd,bkd->bqk"}> : () -> ()
    %cst_25 = arith.constant dense<0.000000e+00> : vector<2x16x16xf32>
    %69 = tpu.matmul %64, %66, %cst_25 {dimension_numbers = #tpu.dot_dimension_numbers<[2], [2], [1], [1], [0, 0, 0, 1, 1, 1], [0], [0]>} : vector<2x16x128xbf16>, vector<2x16x128xbf16>, vector<2x16x16xf32> -> vector<2x16x16xf32>
    "tpu.trace_stop"() : () -> ()
    %cst_26 = arith.constant 0.0883883461 : f32
    %70 = vector.broadcast %cst_26 : f32 to vector<2x16x16xf32>
    %71 = arith.mulf %69, %70 : vector<2x16x16xf32>
    %cst_27 = arith.constant dense<0xFF800000> : vector<2x16xf32>
    %72 = vector.multi_reduction <maximumf>, %71, %cst_27 [2] : vector<2x16x16xf32> to vector<2x16xf32>
    %73 = vector.shape_cast %72 : vector<2x16xf32> to vector<2x16x1xf32>
    %74 = vector.broadcast %73 : vector<2x16x1xf32> to vector<2x16x16xf32>
    %75 = arith.subf %71, %74 : vector<2x16x16xf32>
    %76 = math.exp %75 : vector<2x16x16xf32>
    %cst_28 = arith.constant dense<0.000000e+00> : vector<2x16xf32>
    %77 = vector.multi_reduction <add>, %76, %cst_28 [2] : vector<2x16x16xf32> to vector<2x16xf32>
    %78 = vector.shape_cast %77 : vector<2x16xf32> to vector<2x16x1xf32>
    %79 = tpu.reciprocal %78 {approx = true} : vector<2x16x1xf32> -> vector<2x16x1xf32>
    %80 = vector.broadcast %79 : vector<2x16x1xf32> to vector<2x16x16xf32>
    %81 = arith.mulf %76, %80 : vector<2x16x16xf32>
    %82 = arith.truncf %81 : vector<2x16x16xf32> to vector<2x16x16xbf16>
    "tpu.trace_start"() <{level = 10 : i32, message = "bqk,bkd->bqd"}> : () -> ()
    %cst_29 = arith.constant dense<0.000000e+00> : vector<2x16x128xf32>
    %83 = tpu.matmul %82, %68, %cst_29 {dimension_numbers = #tpu.dot_dimension_numbers<[2], [1], [1], [2], [0, 0, 0, 1, 1, 2], [0], [0]>} : vector<2x16x16xbf16>, vector<2x16x128xbf16>, vector<2x16x128xf32> -> vector<2x16x128xf32>
    "tpu.trace_stop"() : () -> ()
    %84 = tpu.concatenate %62, %83 in 2 : vector<2x16x128xf32>, vector<2x16x128xf32> -> vector<2x16x256xf32>
    %85 = vector.shape_cast %84 : vector<2x16x256xf32> to vector<32x256xf32>
    %86 = arith.truncf %85 : vector<32x256xf32> to vector<32x256xbf16>
    %c0_30 = arith.constant 0 : index
    %c0_31 = arith.constant 0 : index
    %c0_32 = arith.constant 0 : index
    %87 = vector.load %arg5[%c0_30, %c0_31, %c0_32] : memref<1x256x256xbf16, #tpu.memory_space<vmem>>, vector<1x256x256xbf16>
    %88 = vector.shape_cast %87 : vector<1x256x256xbf16> to vector<256x256xbf16>
    %cst_33 = arith.constant dense<0.000000e+00> : vector<32x256xf32>
    %89 = tpu.matmul %86, %88, %cst_33 {dimension_numbers = #tpu.dot_dimension_numbers<[1], [0], [0], [1], [0, 0, 1, 1], [], []>} : vector<32x256xbf16>, vector<256x256xbf16>, vector<32x256xf32> -> vector<32x256xf32>
    %c0_34 = arith.constant 0 : index
    %c0_35 = arith.constant 0 : index
    %c0_36 = arith.constant 0 : index
    %90 = vector.load %arg6[%c0_34, %c0_35, %c0_36] : memref<1x1x256xf32, #tpu.memory_space<vmem>>, vector<1x1x256xf32>
    %91 = vector.shape_cast %90 : vector<1x1x256xf32> to vector<1x256xf32>
    %92 = vector.broadcast %91 : vector<1x256xf32> to vector<32x256xf32>
    %93 = arith.addf %89, %92 : vector<32x256xf32>
    %94 = vector.shape_cast %93 : vector<32x256xf32> to vector<2x16x256xf32>
    %95 = arith.addf %3, %94 : vector<2x16x256xf32>
    %c0_37 = arith.constant 0 : index
    %c0_38 = arith.constant 0 : index
    %c0_39 = arith.constant 0 : index
    %96 = vector.load %arg13[%c0_37, %c0_38, %c0_39] : memref<1x1x256xf32, #tpu.memory_space<vmem>>, vector<1x1x256xf32>
    %97 = vector.shape_cast %96 : vector<1x1x256xf32> to vector<1x256xf32>
    %c0_40 = arith.constant 0 : index
    %c0_41 = arith.constant 0 : index
    %c0_42 = arith.constant 0 : index
    %98 = vector.load %arg14[%c0_40, %c0_41, %c0_42] : memref<1x1x256xf32, #tpu.memory_space<vmem>>, vector<1x1x256xf32>
    %99 = vector.shape_cast %98 : vector<1x1x256xf32> to vector<1x256xf32>
    %cst_43 = arith.constant dense<0.000000e+00> : vector<2x16xf32>
    %100 = vector.multi_reduction <add>, %95, %cst_43 [2] : vector<2x16x256xf32> to vector<2x16xf32>
    %101 = vector.shape_cast %100 : vector<2x16xf32> to vector<2x16x1xf32>
    %cst_44 = arith.constant 2.560000e+02 : f32
    %102 = vector.broadcast %cst_44 : f32 to vector<2x16x1xf32>
    %103 = arith.divf %101, %102 : vector<2x16x1xf32>
    %104 = vector.broadcast %103 : vector<2x16x1xf32> to vector<2x16x256xf32>
    %105 = arith.subf %95, %104 : vector<2x16x256xf32>
    %106 = arith.mulf %105, %105 : vector<2x16x256xf32>
    %cst_45 = arith.constant dense<0.000000e+00> : vector<2x16xf32>
    %107 = vector.multi_reduction <add>, %106, %cst_45 [2] : vector<2x16x256xf32> to vector<2x16xf32>
    %108 = vector.shape_cast %107 : vector<2x16xf32> to vector<2x16x1xf32>
    %cst_46 = arith.constant 2.560000e+02 : f32
    %109 = vector.broadcast %cst_46 : f32 to vector<2x16x1xf32>
    %110 = arith.divf %108, %109 : vector<2x16x1xf32>
    %111 = vector.broadcast %103 : vector<2x16x1xf32> to vector<2x16x256xf32>
    %112 = arith.subf %95, %111 : vector<2x16x256xf32>
    %cst_47 = arith.constant 9.99999974E-6 : f32
    %113 = vector.broadcast %cst_47 : f32 to vector<2x16x1xf32>
    %114 = arith.addf %110, %113 : vector<2x16x1xf32>
    %115 = math.rsqrt %114 : vector<2x16x1xf32>
    %116 = vector.broadcast %115 : vector<2x16x1xf32> to vector<2x16x256xf32>
    %117 = arith.mulf %112, %116 : vector<2x16x256xf32>
    %118 = vector.shape_cast %97 : vector<1x256xf32> to vector<1x1x256xf32>
    %119 = vector.broadcast %118 : vector<1x1x256xf32> to vector<2x16x256xf32>
    %120 = arith.mulf %117, %119 : vector<2x16x256xf32>
    %121 = vector.shape_cast %99 : vector<1x256xf32> to vector<1x1x256xf32>
    %122 = vector.broadcast %121 : vector<1x1x256xf32> to vector<2x16x256xf32>
    %123 = arith.addf %120, %122 : vector<2x16x256xf32>
    %124 = vector.shape_cast %123 : vector<2x16x256xf32> to vector<32x256xf32>
    %125 = arith.truncf %124 : vector<32x256xf32> to vector<32x256xbf16>
    %c0_48 = arith.constant 0 : index
    %c0_49 = arith.constant 0 : index
    %c0_50 = arith.constant 0 : index
    %126 = vector.load %arg7[%c0_48, %c0_49, %c0_50] : memref<1x256x512xbf16, #tpu.memory_space<vmem>>, vector<1x256x512xbf16>
    %127 = vector.shape_cast %126 : vector<1x256x512xbf16> to vector<256x512xbf16>
    %cst_51 = arith.constant dense<0.000000e+00> : vector<32x512xf32>
    %128 = tpu.matmul %125, %127, %cst_51 {dimension_numbers = #tpu.dot_dimension_numbers<[1], [0], [0], [1], [0, 0, 1, 1], [], []>} : vector<32x256xbf16>, vector<256x512xbf16>, vector<32x512xf32> -> vector<32x512xf32>
    %c0_52 = arith.constant 0 : index
    %c0_53 = arith.constant 0 : index
    %c0_54 = arith.constant 0 : index
    %129 = vector.load %arg8[%c0_52, %c0_53, %c0_54] : memref<1x1x512xf32, #tpu.memory_space<vmem>>, vector<1x1x512xf32>
    %130 = vector.shape_cast %129 : vector<1x1x512xf32> to vector<1x512xf32>
    %131 = vector.broadcast %130 : vector<1x512xf32> to vector<32x512xf32>
    %132 = arith.addf %128, %131 : vector<32x512xf32>
    %cst_55 = arith.constant 0.000000e+00 : f32
    %133 = vector.broadcast %cst_55 : f32 to vector<32x512xf32>
    %134 = arith.maximumf %132, %133 : vector<32x512xf32>
    %135 = arith.truncf %134 : vector<32x512xf32> to vector<32x512xbf16>
    %c0_56 = arith.constant 0 : index
    %c0_57 = arith.constant 0 : index
    %c0_58 = arith.constant 0 : index
    %136 = vector.load %arg9[%c0_56, %c0_57, %c0_58] : memref<1x512x256xbf16, #tpu.memory_space<vmem>>, vector<1x512x256xbf16>
    %137 = vector.shape_cast %136 : vector<1x512x256xbf16> to vector<512x256xbf16>
    %cst_59 = arith.constant dense<0.000000e+00> : vector<32x256xf32>
    %138 = tpu.matmul %135, %137, %cst_59 {dimension_numbers = #tpu.dot_dimension_numbers<[1], [0], [0], [1], [0, 0, 1, 1], [], []>} : vector<32x512xbf16>, vector<512x256xbf16>, vector<32x256xf32> -> vector<32x256xf32>
    %c0_60 = arith.constant 0 : index
    %c0_61 = arith.constant 0 : index
    %c0_62 = arith.constant 0 : index
    %139 = vector.load %arg10[%c0_60, %c0_61, %c0_62] : memref<1x1x256xf32, #tpu.memory_space<vmem>>, vector<1x1x256xf32>
    %140 = vector.shape_cast %139 : vector<1x1x256xf32> to vector<1x256xf32>
    %141 = vector.broadcast %140 : vector<1x256xf32> to vector<32x256xf32>
    %142 = arith.addf %138, %141 : vector<32x256xf32>
    %143 = vector.shape_cast %142 : vector<32x256xf32> to vector<2x16x256xf32>
    %144 = arith.addf %95, %143 : vector<2x16x256xf32>
    %c0_63 = arith.constant 0 : index
    %c0_64 = arith.constant 0 : index
    %c0_65 = arith.constant 0 : index
    %145 = vector.load %arg15[%c0_63, %c0_64, %c0_65] : memref<2x16x256xf32, #tpu.memory_space<vmem>>, vector<2x16x256xf32>
    tpu.vector_store %arg15[%c0_63, %c0_64, %c0_65], %144 {strides = array<i32>} : memref<2x16x256xf32, #tpu.memory_space<vmem>>, vector<2x16x256xf32>,
    return
  }
  func.func @transform_0(%arg0: i32, %arg1: i32) -> (i32, i32, i32) {
    %c0_i32 = arith.constant 0 : i32
    %c0_i32_0 = arith.constant 0 : i32
    %c0_i32_1 = arith.constant 0 : i32
    return %arg0, %c0_i32, %c0_i32_0 : i32, i32, i32
  }
  func.func @transform_1(%arg0: i32, %arg1: i32) -> (i32, i32, i32) {
    %c0_i32 = arith.constant 0 : i32
    %c0_i32_0 = arith.constant 0 : i32
    %c0_i32_1 = arith.constant 0 : i32
    return %arg1, %c0_i32, %c0_i32_0 : i32, i32, i32
  }
  func.func @transform_2(%arg0: i32, %arg1: i32) -> (i32, i32, i32) {
    %c0_i32 = arith.constant 0 : i32
    %c0_i32_0 = arith.constant 0 : i32
    %c0_i32_1 = arith.constant 0 : i32
    return %arg1, %c0_i32, %c0_i32_0 : i32, i32, i32
  }
  func.func @transform_3(%arg0: i32, %arg1: i32) -> (i32, i32, i32) {
    %c0_i32 = arith.constant 0 : i32
    %c0_i32_0 = arith.constant 0 : i32
    %c0_i32_1 = arith.constant 0 : i32
    return %arg1, %c0_i32, %c0_i32_0 : i32, i32, i32
  }
  func.func @transform_4(%arg0: i32, %arg1: i32) -> (i32, i32, i32) {
    %c0_i32 = arith.constant 0 : i32
    %c0_i32_0 = arith.constant 0 : i32
    %c0_i32_1 = arith.constant 0 : i32
    return %arg1, %c0_i32, %c0_i32_0 : i32, i32, i32
  }
  func.func @transform_5(%arg0: i32, %arg1: i32) -> (i32, i32, i32) {
    %c0_i32 = arith.constant 0 : i32
    %c0_i32_0 = arith.constant 0 : i32
    %c0_i32_1 = arith.constant 0 : i32
    return %arg1, %c0_i32, %c0_i32_0 : i32, i32, i32
  }
  func.func @transform_6(%arg0: i32, %arg1: i32) -> (i32, i32, i32) {
    %c0_i32 = arith.constant 0 : i32
    %c0_i32_0 = arith.constant 0 : i32
    %c0_i32_1 = arith.constant 0 : i32
    return %arg1, %c0_i32, %c0_i32_0 : i32, i32, i32
  }
  func.func @transform_7(%arg0: i32, %arg1: i32) -> (i32, i32, i32) {
    %c0_i32 = arith.constant 0 : i32
    %c0_i32_0 = arith.constant 0 : i32
    %c0_i32_1 = arith.constant 0 : i32
    return %arg1, %c0_i32, %c0_i32_0 : i32, i32, i32
  }
  func.func @transform_8(%arg0: i32, %arg1: i32) -> (i32, i32, i32) {
    %c0_i32 = arith.constant 0 : i32
    %c0_i32_0 = arith.constant 0 : i32
    %c0_i32_1 = arith.constant 0 : i32
    return %arg1, %c0_i32, %c0_i32_0 : i32, i32, i32
  }
  func.func @transform_9(%arg0: i32, %arg1: i32) -> (i32, i32, i32) {
    %c0_i32 = arith.constant 0 : i32
    %c0_i32_0 = arith.constant 0 : i32
    %c0_i32_1 = arith.constant 0 : i32
    return %arg1, %c0_i32, %c0_i32_0 : i32, i32, i32
  }
  func.func @transform_10(%arg0: i32, %arg1: i32) -> (i32, i32, i32) {
    %c0_i32 = arith.constant 0 : i32
    %c0_i32_0 = arith.constant 0 : i32
    %c0_i32_1 = arith.constant 0 : i32
    return %arg1, %c0_i32, %c0_i32_0 : i32, i32, i32
  }
  func.func @transform_11(%arg0: i32, %arg1: i32) -> (i32, i32, i32) {
    %c0_i32 = arith.constant 0 : i32
    %c0_i32_0 = arith.constant 0 : i32
    %c0_i32_1 = arith.constant 0 : i32
    return %arg1, %c0_i32, %c0_i32_0 : i32, i32, i32
  }
  func.func @transform_12(%arg0: i32, %arg1: i32) -> (i32, i32, i32) {
    %c0_i32 = arith.constant 0 : i32
    %c0_i32_0 = arith.constant 0 : i32
    %c0_i32_1 = arith.constant 0 : i32
    return %arg1, %c0_i32, %c0_i32_0 : i32, i32, i32
  }
  func.func @transform_13(%arg0: i32, %arg1: i32) -> (i32, i32, i32) {
    %c0_i32 = arith.constant 0 : i32
    %c0_i32_0 = arith.constant 0 : i32
    %c0_i32_1 = arith.constant 0 : i32
    return %arg0, %c0_i32, %c0_i32_0 : i32, i32, i32
  }
}

</mosaic_0001>

<bundles_post_ra>
// kernel: tpu_custom_call.1
= control target key start
LH: loop header
LB: loop body
LE: loop exit
PB: predicated region body
PF: predicated region fallthrough
CT: control target
= control target key end

     0   :  { %s6422_s0 = inlined_call_operand.hbm [shape: f32[4,16,256], index: 0, kind: input, shape index: {}]   ;;  %s6423_s1 = inlined_call_operand.hbm [shape: bf16[2,256,768], index: 1, kind: input, shape index: {}]   ;;  %s6424_s2 = inlined_call_operand.hbm [shape: f32[2,1,768], index: 2, kind: input, shape index: {}]   ;;  %s6425_s3 = inlined_call_operand.hbm [shape: bf16[2,256,256], index: 3, kind: input, shape index: {}]   ;;  %s6426_s4 = inlined_call_operand.vmem [shape: f32[2,1,256], index: 4, kind: input, shape index: {}]   ;;  %s6427_s5 = inlined_call_operand.hbm [shape: bf16[2,256,512], index: 5, kind: input, shape index: {}]   ;;  %s6428_s6 = inlined_call_operand.vmem [shape: f32[2,1,512], index: 6, kind: input, shape index: {}]   ;;  %s6429_s7 = inlined_call_operand.hbm [shape: bf16[2,512,256], index: 7, kind: input, shape index: {}]   ;;  %s6430_s8 = inlined_call_operand.vmem [shape: f32[2,1,256], index: 8, kind: input, shape index: {}]   ;;  %s6431_s9 = inlined_call_operand.vmem [shape: f32[2,1,256], index: 9, kind: input, shape index: {}]   ;;  %s6432_s10 = inlined_call_operand.vmem [shape: f32[2,1,256], index: 10, kind: input, shape index: {}]   ;;  %s6433_s11 = inlined_call_operand.vmem [shape: f32[2,1,256], index: 11, kind: input, shape index: {}]   ;;  %s6434_s12 = inlined_call_operand.vmem [shape: f32[2,1,256], index: 12, kind: input, shape index: {}]   ;;  %s6435_s13 = inlined_call_operand.hbm [shape: f32[4,16,256], index: 13, kind: output, shape index: {}]  }
   0x1   :  { %6464 = sst [smem:[#allocation37_spill]] %s6422_s0 }
   0x2   :  { %6465 = sst [smem:[#allocation38_spill]] %s6423_s1 }
   0x3   :  { %6466 = sst [smem:[#allocation39_spill]] %s6424_s2 }
   0x4   :  { %6467 = sst [smem:[#allocation40_spill]] %s6425_s3 }
   0x5   :  { %6468 = sst [smem:[#allocation41_spill]] %s6426_s4 }
   0x6   :  { %6469 = sst [smem:[#allocation42_spill]] %s6427_s5 }
   0x7   :  { %6470 = sst [smem:[#allocation43_spill]] %s6428_s6 }
   0x8   :  { %6471 = sst [smem:[#allocation44_spill]] %s6429_s7 }
   0x9   :  { %6472 = sst [smem:[#allocation45_spill]] %s6430_s8 }
   0xa   :  { %6473 = sst [smem:[#allocation46_spill]] %s6431_s9 }
   0xb   :  { %6474 = sst [smem:[#allocation47_spill]] %s6432_s10 }
   0xc   :  { %6475 = sst [smem:[#allocation48_spill]] %s6433_s11 }
   0xd   :  { %6476 = sst [smem:[#allocation49_spill]] %s6434_s12 }
   0xe   :  { %6477 = sst [smem:[#allocation50_spill]] %s6435_s13 }
   0xf   :  { %18 = vsyncpa [#allocation3], 0 }
  0x10   :  { %20 = vsyncpa [#allocation3 + $0x1], 0 }
  0x11   :  { %21 = vsyncpa [#allocation6], 0 }
  0x12   :  { %23 = vsyncpa [#allocation6 + $0x1], 0 }
  0x13   :  { %24 = vsyncpa [#allocation9], 0 }
  0x14   :  { %26 = vsyncpa [#allocation9 + $0x1], 0 }
  0x15   :  { %27 = vsyncpa [#allocation12], 0 }
  0x16   :  { %29 = vsyncpa [#allocation12 + $0x1], 0 }
  0x17   :  { %30 = vsyncpa [#allocation4], 0 }
  0x18   :  { %32 = vsyncpa [#allocation4 + $0x1], 0  ;;  %s5238_s25 = smov 0   ;;  %s5240_s26 = smov 0  }
  0x19   :  { %s5242_s27 = smov 0   ;;  %s5244_s28 = smov 0  }
  0x1a   :  { %s5246_s29 = smov 0   ;;  %s5248_s30 = smov 0  }
  0x1b   :  { %s5250_s14 = smov 0   ;;  %s5252_s15 = smov 0  }
  0x1c   :  { %s5254_s16 = smov 0   ;;  %s5256_s17 = smov 0  }
  0x1d   :  { %s5258_s18 = smov 0  }
  0x1e LB: > { %6478 = sst [smem:[#allocation19_spill]] %s5113_s26  ;;  %p6438_p0 = scmp.eq.s32.totalorder %s5149_s18, 0  ;;  %s5149_s18 = sphi %s5258_s18, %s38_s18   ;;  %s5145_s17 = sphi %s5256_s17, %s6559_s17   ;;  %s5141_s16 = sphi %s5254_s16, %s6558_s16   ;;  %s5137_s15 = sphi %s5252_s15, %s6557_s15   ;;  %s5133_s14 = sphi %s5250_s14, %s6556_s14   ;;  %s5129_s30 = sphi %s5248_s30, %s6555_s30   ;;  %s5125_s29 = sphi %s5246_s29, %s6554_s29   ;;  %s5121_s28 = sphi %s5244_s28, %s6553_s28   ;;  %s5117_s27 = sphi %s5242_s27, %s6552_s27   ;;  %s5113_s26 = sphi %s5240_s26, %s6551_s26   ;;  %s5109_s25 = sphi %s5238_s25, %s6550_s25  }
  0x1f   : > { %6479 = sst [smem:[#allocation20_spill]] %s5117_s27  ;;  %p90_p1 = scmp.ne.s32.totalorder %s5117_s27, %s5113_s26 }
  0x20   : > { %6480 = sst [smem:[#allocation21_spill]] %s5121_s28  ;;  %p6437_p3 = scmp.lt.s32.totalorder %s5149_s18, 4 }
  0x21   : > { %6481 = sst [smem:[#allocation22_spill]] %s5125_s29  ;;  %p92_p4 = por %p90_p1, %p6438_p0 }
  0x22   : > { %6482 = sst [smem:[#allocation23_spill]] %s5129_s30  ;;  %s5304_s21 = sand.u32 1, %s5117_s27  }
  0x23   : > { %6483 = sst [smem:[#allocation24_spill]] %s5133_s14  ;;  %s4252_s22 = smul.u32 768, %s5304_s21 }
  0x24   : > { %6484 = sst [smem:[#allocation25_spill]] %s5137_s15  ;;  %p5309_p5 = pnand %p6437_p3, %p92_p4 }
  0x25   : > { %6485 = sst [smem:[#allocation26_spill]] %s5141_s16  ;;  %s4253_s24 = smul.u32 12288, %s5141_s16 }
  0x26   : > { %6486 = sst [smem:[#allocation27_spill]] %s5145_s17  ;;  %s6489_s1 = sld [smem:[#allocation38_spill]] }
  0x27   : > { %6487 = sst [smem:[#allocation28_spill]] %s5149_s18  ;;  %s458_s20 = scalar_lea.vmem [#allocation5], %s4252_s22 }
  0x28   : > { %s6488_s23 = scalar_select %p5309_p5, 1, 0 }
  0x29   : > { %s465_s12 = sshll.u32 %s458_s20, 4  ;;  %s6490_s11 = sand.u32 1, %s5149_s18   ;;  %s5319_s12 = int_to_ptr.vmem [resolvable:$true] %s465_s12 }
  0x2a   : > { %s5323_s10 = scalar_lea.sflag [#allocation6], %s6490_s11  ;;  %p5329_p7 = pneg %p5309_p5 }
  0x2c   : > { %s5317_s19 = scalar_lea.hbm %s6489_s1, %s4253_s24  ;;  %s4840_s20 = scalar_lea.hbm %s6489_s1, 24576 }
  0x2d   : > { %s4835_s9 = scalar_lea.hbm %s5317_s19, 12288  ;;  %p4841_p10 = scmp.lt.u32.totalorder %s5317_s19, %s6489_s1 }
  0x2e   : > { %p4836_p6 = scmp.ne.s32.totalorder %s5317_s19, %s4835_s9  ;;  %p4842_p11 = scmp.lt.u32.totalorder %s4840_s20, %s4835_s9 }
  0x2f   : > { %p4844_p13 = scmp.lt.u32.totalorder %s4835_s9, %s5317_s19 }
  0x30   : > { %p4838_p8 = pnand %p5329_p7, %p4836_p6  ;;  %p4843_p12 = por %p4842_p11, %p4841_p10 }
  0x32   : > { %p4839_p9 = pneg %p4838_p8  ;;  %p4845_p1 = por %p4844_p13, %p4843_p12 }
  0x34   : > { %p4846_p4 = pnand %p4845_p1, %p4839_p9 }
  0x36   : > { %4849 = shalt.err (!%p4846_p4)
}
  0x37   : > { %s4850_s11 = scalar_lea.vmem %s5319_s12, 12288  ;;  %s5151_s13 = smov [#allocation5]  }
  0x38   : > { %p4851_p6 = scmp.ne.s32.totalorder %s5319_s12, %s4850_s11  ;;  %s4855_s15 = sshll.u32 %s5151_s13, 4  ;;  %s4856_s15 = int_to_ptr.vmem [resolvable:$false] %s4855_s15 }
  0x39   : > { %s4857_s22 = scalar_lea.vmem %s4856_s15, 24576  ;;  %p4858_p2 = scmp.lt.s32.totalorder %s5319_s12, %s4856_s15 }
  0x3a   : > { %p4853_p8 = pnand %p4851_p6, %p5329_p7  ;;  %p4859_p0 = scmp.lt.s32.totalorder %s4857_s22, %s4850_s11 }
  0x3c   : > { %p4854_p3 = pneg %p4853_p8  ;;  %p4860_p10 = por %p4859_p0, %p4858_p2 }
  0x3e   : > { %p4861_p11 = pnand %p4860_p10, %p4854_p3 }
  0x40   : > { %4864 = shalt.err (!%p4861_p11)
}
  0x41   : > { %s5152_s9 = smov 384   ;;  %s5153_s20 = smov 24  }
  0x42   : > { %4278 = dma.hbm_to_vmem [thread:$0]  (!%p5309_p5), %s5317_s19, 12288, %s5319_s12, %s5323_s10, %s5152_s9, %s5152_s9, %s5153_s20  }
  0x43   : > { %p3885_p9 = scmp.ge.s32.totalorder %s5149_s18, 1  ;;  %p604_p12 = scmp.lt.s32.totalorder %s5149_s18, 5 }
  0x44   : > { %s3876_s24 = sshll.u32 %s5304_s21, 8  ;;  %s4167_s13 = sshll.u32 %s5141_s16, 12 }
  0x45   : > { %p5356_p0 = pnand %p3885_p9, %p604_p12  ;;  %s498_s15 = scalar_lea.vmem [#allocation8], %s3876_s24 }
  0x46   : > { %s505_s22 = sshll.u32 %s498_s15, 4  ;;  %s6493_s3 = sld [smem:[#allocation40_spill]]  ;;  %s5366_s22 = int_to_ptr.vmem [resolvable:$true] %s505_s22 }
  0x47   : > { %s6492_s11 = scalar_select %p5356_p0, 1, 0 }
  0x48   : > { %s6494_s12 = sand.u32 1, %s5149_s18  }
  0x49   : > { %s5370_s19 = scalar_lea.sflag [#allocation9], %s6494_s12 }
  0x4c   : > { %s5364_s4 = scalar_lea.hbm %s6493_s3, %s4167_s13  ;;  %s4870_s1 = scalar_lea.hbm %s6493_s3, 8192 }
  0x4d   : > { %s4865_s9 = scalar_lea.hbm %s5364_s4, 4096  ;;  %p4871_p1 = scmp.lt.u32.totalorder %s5364_s4, %s6493_s3 }
  0x4e   : > { %p4866_p2 = scmp.ne.s32.totalorder %s5364_s4, %s4865_s9  ;;  %p4872_p4 = scmp.lt.u32.totalorder %s4870_s1, %s4865_s9 }
  0x4f   : > { %p4874_p8 = scmp.lt.u32.totalorder %s4865_s9, %s5364_s4 }
  0x50   : > { %p4868_p3 = pnand %p4866_p2, %p5329_p7  ;;  %p4873_p6 = por %p4872_p4, %p4871_p1 }
  0x52   : > { %p4869_p13 = pneg %p4868_p3  ;;  %p4875_p10 = por %p4874_p8, %p4873_p6 }
  0x54   : > { %p4876_p11 = pnand %p4875_p10, %p4869_p13 }
  0x56   : > { %4879 = shalt.err (!%p4876_p11)
}
  0x57   : > { %s4880_s15 = scalar_lea.vmem %s5366_s22, 4096  ;;  %s5154_s12 = smov [#allocation8]  }
  0x58   : > { %p4881_p9 = scmp.ne.s32.totalorder %s5366_s22, %s4880_s15  ;;  %s4885_s20 = sshll.u32 %s5154_s12, 4  ;;  %s4886_s20 = int_to_ptr.vmem [resolvable:$false] %s4885_s20 }
  0x59   : > { %s4887_s24 = scalar_lea.vmem %s4886_s20, 8192  ;;  %p4888_p3 = scmp.lt.s32.totalorder %s5366_s22, %s4886_s20 }
  0x5a   : > { %p4883_p12 = pnand %p4881_p9, %p5329_p7  ;;  %p4889_p0 = scmp.lt.s32.totalorder %s4887_s24, %s4880_s15 }
  0x5c   : > { %p4884_p2 = pneg %p4883_p12  ;;  %p4890_p1 = por %p4889_p0, %p4888_p3 }
  0x5e   : > { %p4891_p4 = pnand %p4890_p1, %p4884_p2 }
  0x60   : > { %4894 = shalt.err (!%p4891_p4)
}
  0x61   : > { %s6439_s9 = smov 128   ;;  %s6440_s1 = smov 8  }
  0x62   : > { %4284 = dma.hbm_to_vmem [thread:$0]  (!%p5309_p5), %s5364_s4, 4096, %s5366_s22, %s5370_s19, %s6439_s9, %s6439_s9, %s6440_s1  }
  0x63   : > { %s5398_s6 = sadd.s32 4294967295, %s5149_s18   ;;  %s3867_s13 = sadd.s32 4294967294, %s5149_s18  }
  0x64   : > { %s47_s15 = sadd.s32 1, %s5141_s16  ;;  %s50_s12 = sadd.s32 1, %s5145_s17 }
  0x65   : > { %p48_p0 = scmp.ge.s32.totalorder %s47_s15, 2  ;;  %s57_s20 = sadd.s32 1, %s5129_s30 }
  0x66   : > { %p64_p13 = scmp.ne.s32.totalorder %s5129_s30, %s5125_s29  ;;  %p70_p6 = scmp.ne.s32.totalorder %s5125_s29, %s5121_s28 }
  0x67   : > { %s6561_s15 = smov (%p48_p0, %s47_s15), 0  ;;  %s6563_s12 = smov (!%p48_p0, %s50_s12), %s5145_s17 }
  0x68   : > { %6495 = sst [smem:[#allocation29_spill]] %s6561_s15  ;;  %p6496_p8 = scmp.eq.s32.totalorder %s5149_s18, 0 }
  0x69   : > { %p71_p11 = scmp.eq.s32.totalorder %s5398_s6, 0  ;;  %p52_p9 = scmp.ge.s32.totalorder %s6563_s12, 2 }
  0x6a   : > { %p5416_p10 = por %p6496_p8, %p64_p13  ;;  %s80_s22 = ssub.s32 %s5141_s16, %s6561_s15 }
  0x6b   : > { %p5426_p12 = por %p71_p11, %p70_p6  ;;  %p81_p2 = scmp.eq.s32.totalorder %s80_s22, 0 }
  0x6c   : > { %s6565_s12 = smov (%p52_p9, %s6563_s12), 0  ;;  %s6501_s9 = sadd.s32 1, %s5117_s27 }
  0x6d   : > { %s6498_s24 = scalar_select %p5426_p12, 1, 0 }
  0x6e   : > { %6500 = sst [smem:[#allocation31_spill]] %s6565_s12  ;;  %s54_s3 = ssub.s32 %s5145_s17, %s6565_s12 }
  0x6f   : > { %6499 = sst [smem:[#allocation30_spill]] %s6498_s24  ;;  %p6503_p3 = scmp.ne.s32.totalorder %s5113_s26, %s5109_s25 }
  0x70   : > { %s5435_s1 = scalar_select %p81_p2, %s5117_s27, %s6501_s9  }
  0x71   : > { %p5442_p1 = por %p6503_p3, %p71_p11  ;;  %p55_p4 = scmp.eq.s32.totalorder %s54_s3, 0 }
  0x72   : > { %6502 = sst [smem:[#allocation32_spill]] %s5435_s1  ;;  %p406_p0 = scmp.eq.s32.totalorder %s5398_s6, 3 }
  0x73   : > { %s6504_s14 = scalar_select %p5442_p1, 1, 0 }
  0x74   : > { %p412_p8 = scmp.eq.s32.totalorder %s3867_s13, 3  ;;  %s432_s15 = sand.u32 1, %s5129_s30  }
  0x75   : > { %s5449_s22 = scalar_select %p55_p4, %s5129_s30, %s57_s20  }
  0x76   : > { %p5454_p9 = por %p406_p0, %p64_p13  ;;  %p5461_p2 = por %p412_p8, %p70_p6 }
  0x77   : > { %6505 = sst [smem:[#allocation33_spill]] %s5449_s22  ;;  %s3870_s25 = sshll.u32 %s432_s15, 6 }
  0x78   : > { %s6506_s24 = scalar_select %p5454_p9, 1, 0 }
  0x79   : > { %s6508_s9 = scalar_select %p5461_p2, 1, 0 }
  0x7a   : > { %6507 = sst [smem:[#allocation34_spill]] %s6506_s24  ;;  %s4166_s12 = sshll.u32 %s5145_s17, 10 }
  0x7b   : > { %6509 = sst [smem:[#allocation35_spill]] %s6508_s9  ;;  %s6510_s0 = sld [smem:[#allocation37_spill]] }
  0x7c   : > { %s436_s13 = scalar_lea.vmem [#allocation2], %s3870_s25  ;;  %p6511_p13 = scmp.lt.s32.totalorder %s5149_s18, 4 }
  0x7d   : > { %s444_s20 = sshll.u32 %s436_s13, 4  ;;  %s4254_s17 = smul.u32 6, %s5304_s21  ;;  %s5471_s20 = int_to_ptr.vmem [resolvable:$true] %s444_s20 }
  0x7e   : > { %p5477_p6 = pnand %p6511_p13, %p5416_p10  ;;  %s5482_s27 = scalar_lea.sflag [#allocation3], %s432_s15 }
  0x80   : > { %p4897_p3 = pneg %p5477_p6 }
  0x81   : > { %s5469_s3 = scalar_lea.hbm %s6510_s0, %s4166_s12  ;;  %s4900_s25 = scalar_lea.hbm %s6510_s0, 2048 }
  0x82   : > { %s4895_s1 = scalar_lea.hbm %s5469_s3, 1024  ;;  %p4901_p10 = scmp.lt.u32.totalorder %s5469_s3, %s6510_s0 }
  0x83   : > { %p4896_p11 = scmp.ne.s32.totalorder %s5469_s3, %s4895_s1  ;;  %p4902_p8 = scmp.lt.u32.totalorder %s4900_s25, %s4895_s1 }
  0x84   : > { %p4904_p2 = scmp.lt.u32.totalorder %s4895_s1, %s5469_s3 }
  0x85   : > { %p4898_p4 = pnand %p4897_p3, %p4896_p11  ;;  %p4903_p13 = por %p4902_p8, %p4901_p10 }
  0x87   : > { %p4899_p0 = pneg %p4898_p4  ;;  %p4905_p9 = por %p4904_p2, %p4903_p13 }
  0x89   : > { %p4906_p1 = pnand %p4905_p9, %p4899_p0 }
  0x8b   : > { %4909 = shalt.err (!%p4906_p1)
}
  0x8c   : > { %s4910_s15 = scalar_lea.vmem %s5471_s20, 1024  ;;  %s5157_s12 = smov [#allocation2]  }
  0x8d   : > { %p4911_p11 = scmp.ne.s32.totalorder %s5471_s20, %s4910_s15  ;;  %s4915_s4 = sshll.u32 %s5157_s12, 4  ;;  %s4916_s4 = int_to_ptr.vmem [resolvable:$false] %s4915_s4 }
  0x8e   : > { %s4917_s30 = scalar_lea.vmem %s4916_s4, 2048  ;;  %p4918_p5 = scmp.lt.s32.totalorder %s5471_s20, %s4916_s4 }
  0x8f   : > { %p4913_p4 = pnand %p4911_p11, %p4897_p3  ;;  %p4919_p10 = scmp.lt.s32.totalorder %s4917_s30, %s4910_s15 }
  0x91   : > { %p4914_p12 = pneg %p4913_p4  ;;  %p4920_p8 = por %p4919_p10, %p4918_p5 }
  0x93   : > { %p4921_p2 = pnand %p4920_p8, %p4914_p12 }
  0x95   : > { %4924 = shalt.err (!%p4921_p2)
}
  0x96   : > { %s5158_s1 = smov 256   ;;  %s5159_s25 = smov 16  }
  0x97   : > { %4275 = dma.hbm_to_vmem [thread:$0]  (!%p5477_p6), %s5469_s3, 1024, %s5471_s20, %s5482_s27, %s5158_s1, %s5158_s1, %s5159_s25  }
  0x98   : > { %s4255_s13 = smul.u32 96, %s5141_s16  ;;  %s479_s15 = scalar_lea.vmem [#allocation7], %s4254_s17 }
  0x99   : > { %s487_s12 = sshll.u32 %s479_s15, 4  ;;  %s3879_s4 = sshll.u32 %s5304_s21, 9  ;;  %s488_s12 = int_to_ptr.vmem [resolvable:$true] %s487_s12 }
  0x9a   : > { %s6513_s2 = sld [smem:[#allocation39_spill]] }
  0xa0   : > { %s485_s9 = scalar_lea.hbm %s6513_s2, %s4255_s13  ;;  %s4930_s24 = scalar_lea.hbm %s6513_s2, 192 }
  0xa1   : > { %s4925_s28 = scalar_lea.hbm %s485_s9, 96  ;;  %p4931_p9 = scmp.lt.u32.totalorder %s485_s9, %s6513_s2 }
  0xa2   : > { %p4926_p5 = scmp.ne.s32.totalorder %s485_s9, %s4925_s28  ;;  %p4932_p6 = scmp.lt.u32.totalorder %s4930_s24, %s4925_s28 }
  0xa3   : > { %p4934_p0 = scmp.lt.u32.totalorder %s4925_s28, %s485_s9 }
  0xa4   : > { %p4928_p12 = pnand %p4926_p5, %p5329_p7  ;;  %p4933_p3 = por %p4932_p6, %p4931_p9 }
  0xa6   : > { %p4929_p1 = pneg %p4928_p12  ;;  %p4935_p13 = por %p4934_p0, %p4933_p3 }
  0xa8   : > { %p4936_p11 = pnand %p4935_p13, %p4929_p1 }
  0xaa   : > { %4939 = shalt.err (!%p4936_p11)
}
  0xab   : > { %s4940_s0 = scalar_lea.vmem %s488_s12, 96  ;;  %s5160_s17 = smov [#allocation7]  }
  0xac   : > { %p4941_p4 = scmp.ne.s32.totalorder %s488_s12, %s4940_s0  ;;  %s4945_s27 = sshll.u32 %s5160_s17, 4  ;;  %s4946_s27 = int_to_ptr.vmem [resolvable:$false] %s4945_s27 }
  0xad   : > { %s4947_s18 = scalar_lea.vmem %s4946_s27, 192  ;;  %p4948_p2 = scmp.lt.s32.totalorder %s488_s12, %s4946_s27 }
  0xae   : > { %p4943_p10 = pnand %p4941_p4, %p5329_p7  ;;  %p4949_p5 = scmp.lt.s32.totalorder %s4947_s18, %s4940_s0 }
  0xb0   : > { %p4944_p8 = pneg %p4943_p10  ;;  %p4950_p12 = por %p4949_p5, %p4948_p2 }
  0xb2   : > { %p4951_p6 = pnand %p4950_p12, %p4944_p8 }
  0xb4   : > { %4954 = shalt.err (!%p4951_p6)
}
  0xb5   : > { %p6514_p9 = scmp.ne.s32.totalorder %s6488_s23, 0  ;;  %s4168_s28 = sshll.u32 %s5141_s16, 13 }
  0xb6   : > { %s6515_s5 = sld [smem:[#allocation42_spill]]  ;;  %s526_s30 = scalar_lea.vmem [#allocation10], %s3879_s4 }
  0xb7   : > { %4281 = dma.hbm_to_vmem [thread:$0]  (!%p6514_p9), %s485_s9, 96, %s488_s12, %s5323_s10  }
  0xb8   : > { %s533_s22 = sshll.u32 %s526_s30, 4  ;;  %s5543_s22 = int_to_ptr.vmem [resolvable:$true] %s533_s22 }
  0xbc   : > { %s5539_s15 = scalar_lea.hbm %s6515_s5, %s4168_s28  ;;  %s4960_s12 = scalar_lea.hbm %s6515_s5, 16384 }
  0xbd   : > { %s4955_s3 = scalar_lea.hbm %s5539_s15, 8192  ;;  %p4961_p13 = scmp.lt.u32.totalorder %s5539_s15, %s6515_s5 }
  0xbe   : > { %p4956_p1 = scmp.ne.s32.totalorder %s5539_s15, %s4955_s3  ;;  %p4962_p11 = scmp.lt.u32.totalorder %s4960_s12, %s4955_s3 }
  0xbf   : > { %p4964_p10 = scmp.lt.u32.totalorder %s4955_s3, %s5539_s15 }
  0xc0   : > { %p4958_p3 = pnand %p4956_p1, %p5329_p7  ;;  %p4963_p4 = por %p4962_p11, %p4961_p13 }
  0xc2   : > { %p4959_p0 = pneg %p4958_p3  ;;  %p4965_p8 = por %p4964_p10, %p4963_p4 }
  0xc4   : > { %p4966_p2 = pnand %p4965_p8, %p4959_p0 }
  0xc6   : > { %4969 = shalt.err (!%p4966_p2)
}
  0xc7   : > { %s4970_s17 = scalar_lea.vmem %s5543_s22, 8192  ;;  %s5161_s27 = smov [#allocation10]  }
  0xc8   : > { %p4971_p5 = scmp.ne.s32.totalorder %s5543_s22, %s4970_s17  ;;  %s4975_s18 = sshll.u32 %s5161_s27, 4  ;;  %s4976_s18 = int_to_ptr.vmem [resolvable:$false] %s4975_s18 }
  0xc9   : > { %s4977_s24 = scalar_lea.vmem %s4976_s18, 16384  ;;  %p4978_p1 = scmp.lt.s32.totalorder %s5543_s22, %s4976_s18 }
  0xca   : > { %p4973_p12 = pnand %p4971_p5, %p5329_p7  ;;  %p4979_p3 = scmp.lt.s32.totalorder %s4977_s24, %s4970_s17 }
  0xcc   : > { %p4974_p6 = pneg %p4973_p12  ;;  %p4980_p13 = por %p4979_p3, %p4978_p1 }
  0xce   : > { %p4981_p11 = pnand %p4980_p13, %p4974_p6 }
  0xd0   : > { %4984 = shalt.err (!%p4981_p11)
}
  0xd1   : > { %4287 = dma.hbm_to_vmem [thread:$0]  (!%p6514_p9), %s5539_s15, 8192, %s5543_s22, %s5370_s19, %s5158_s1, %s5158_s1, %s5159_s25  }
  0xd2   : > { %s6516_s7 = sld [smem:[#allocation44_spill]]  ;;  %s554_s10 = scalar_lea.vmem [#allocation11], %s3879_s4 }
  0xd3   : > { %s561_s9 = sshll.u32 %s554_s10, 4  ;;  %s551_s12 = scalar_lea.sflag [#allocation12], %s5304_s21  ;;  %s5579_s9 = int_to_ptr.vmem [resolvable:$true] %s561_s9 }
  0xd8   : > { %s5575_s3 = scalar_lea.hbm %s6516_s7, %s4168_s28  ;;  %s4990_s25 = scalar_lea.hbm %s6516_s7, 16384 }
  0xd9   : > { %s4985_s20 = scalar_lea.hbm %s5575_s3, 8192  ;;  %p4991_p8 = scmp.lt.u32.totalorder %s5575_s3, %s6516_s7 }
  0xda   : > { %p4986_p0 = scmp.ne.s32.totalorder %s5575_s3, %s4985_s20  ;;  %p4992_p2 = scmp.lt.u32.totalorder %s4990_s25, %s4985_s20 }
  0xdb   : > { %p4994_p12 = scmp.lt.u32.totalorder %s4985_s20, %s5575_s3 }
  0xdc   : > { %p4988_p4 = pnand %p4986_p0, %p5329_p7  ;;  %p4993_p5 = por %p4992_p2, %p4991_p8 }
  0xde   : > { %p4989_p10 = pneg %p4988_p4  ;;  %p4995_p6 = por %p4994_p12, %p4993_p5 }
  0xe0   : > { %p4996_p1 = pnand %p4995_p6, %p4989_p10 }
  0xe2   : > { %4999 = shalt.err (!%p4996_p1)
}
  0xe3   : > { %s5000_s4 = scalar_lea.vmem %s5579_s9, 8192  ;;  %s5162_s22 = smov [#allocation11]  }
  0xe4   : > { %p5001_p3 = scmp.ne.s32.totalorder %s5579_s9, %s5000_s4  ;;  %s5005_s0 = sshll.u32 %s5162_s22, 4  ;;  %s5006_s0 = int_to_ptr.vmem [resolvable:$false] %s5005_s0 }
  0xe5   : > { %s5007_s17 = scalar_lea.vmem %s5006_s0, 16384  ;;  %p5008_p0 = scmp.lt.s32.totalorder %s5579_s9, %s5006_s0 }
  0xe6   : > { %p5003_p13 = pnand %p5001_p3, %p5329_p7  ;;  %p5009_p4 = scmp.lt.s32.totalorder %s5007_s17, %s5000_s4 }
  0xe8   : > { %p5004_p11 = pneg %p5003_p13  ;;  %p5010_p8 = por %p5009_p4, %p5008_p0 }
  0xea   : > { %p5011_p2 = pnand %p5010_p8, %p5004_p11 }
  0xec   : > { %5014 = shalt.err (!%p5011_p2)
}
  0xed   : > { %s6517_s27 = smov 8   ;;  %s6518_s18 = smov 128  }
  0xee   : > { %4290 = dma.hbm_to_vmem [thread:$0]  (!%p6514_p9), %s5575_s3, 8192, %s5579_s9, %s551_s12, %s6518_s18, %s6518_s18, %s6517_s27  }
  0xef   : > { %p6519_p7 = scmp.ne.s32.totalorder %s6492_s11, 0 }
  0xf1   : > { %608 = sbr.rel (%p6519_p7) target bundleno = 3268 (0xcc4), region = 72 }
  0xf8   : > { %s6520_s8 = sld [smem:[#allocation30_spill]]  ;;  %s5611_s24 = sand.u32 1, %s5125_s29  }
  0xf9   : > { %s6460_s13 = sshll.u32 %s5611_s24, 6  ;;  %s611_s23 = scalar_lea.sflag [#allocation3], %s5611_s24 }
  0xfa   : > { %s5617_s30 = scalar_lea.vmem [#allocation2], %s6460_s13 }
  0xfe   : > { %p6521_p10 = scmp.ne.s32.totalorder %s6520_s8, 0 }
 0x100   : > { %5088 = dma.done.wait (%p6521_p10), %s611_s23, 1024  }
 0x101   : > { %5090 = vsyncadd (%p6521_p10), %s611_s23, 4294966272  ;;  %s619_s21 = sand.u32 1, %s5398_s6   ;;  %s621_s11 = sand.u32 1, %s5113_s26  }
 0x102   : > { %s4256_s3 = smul.u32 768, %s621_s11  ;;  %s620_s10 = scalar_lea.sflag [#allocation6], %s619_s21 }
 0x103   : > { %p6522_p9 = scmp.ne.s32.totalorder %s6504_s14, 0 }
 0x104   : > { %s5625_s9 = scalar_lea.vmem [#allocation5], %s4256_s3 }
 0x105   : > { %5092 = dma.done.wait (%p6522_p9), %s620_s10, 12384  }
 0x106   : > { %5094 = vsyncadd (%p6522_p9), %s620_s10, 4294954912  ;;  %s4257_s12 = smul.u32 6, %s621_s11  ;;  %s3887_s20 = sshll.u32 %s621_s11, 8 }
 0x107   : > { %s638_s1 = scalar_lea.sflag [#allocation9], %s619_s21  ;;  %s5633_s25 = scalar_lea.vmem [#allocation8], %s3887_s20 }
 0x108   : > { %s5631_s19 = scalar_lea.vmem [#allocation7], %s4257_s12 }
 0x109   : > { %5096 = dma.done.wait (%p6522_p9), %s638_s1, 12288  }
 0x10a   : > { %5098 = vsyncadd (%p6522_p9), %s638_s1, 4294955008  ;;  %s3888_s6 = sshll.u32 %s621_s11, 9  ;;  %s656_s15 = scalar_lea.sflag [#allocation12], %s621_s11 }
 0x10b   : > { %s5639_s28 = scalar_lea.vmem [#allocation10], %s3888_s6  ;;  %s5641_s4 = scalar_lea.vmem [#allocation11], %s3888_s6 }
 0x10c   : > { %5100 = dma.done.wait (%p6522_p9), %s656_s15, 8192  }
 0x10d   : > { %5102 = vsyncadd (%p6522_p9), %s656_s15, 4294959104  ;;  %s6523_s22 = sld [smem:[#allocation24_spill]]  ;;  %s6525_s3 = sld [smem:[#allocation43_spill]] }
 0x10e   : > { %s6527_s1 = sld [smem:[#allocation45_spill]]  ;;  %s6528_s2 = sld [smem:[#allocation46_spill]] }
 0x10f   : > { %s6530_s8 = sld [smem:[#allocation48_spill]] }
 0x113   : > { %p756_p5 = scmp.lt.s32.totalorder %s6523_s22, 1  ;;  %p3898_p12 = scmp.ne.s32.totalorder %s6523_s22, 0 }
 0x114   : > { %v790_v0 = vld [vmem:[%s5617_s30] sm:$0xff] (!%p3898_p12)  ;;  %v791_v1 = vld [vmem:[%s5617_s30 + $0x8] sm:$0xff] (!%p3898_p12)  ;;  %v792_v2 = vld [vmem:[%s5617_s30 + $0x10] sm:$0xff] (!%p3898_p12) }
 0x115   : > { %s757_s0 = scalar_select %p756_p5, %s6523_s22, 1 }
 0x116   : > { %v793_v3 = vld [vmem:[%s5617_s30 + $0x18] sm:$0xff] (!%p3898_p12)  ;;  %v794_v4 = vld [vmem:[%s5617_s30 + $0x20] sm:$0xff] (!%p3898_p12)  ;;  %v795_v5 = vld [vmem:[%s5617_s30 + $0x28] sm:$0xff] (!%p3898_p12) }
 0x117   : > { %s5649_s17 = sshll.u32 %s757_s0, 1  ;;  %s3892_s27 = sshll.u32 %s757_s0, 2  ;;  %v796_v6 = vld [vmem:[%s5617_s30 + $0x30] sm:$0xff] (!%p3898_p12)  ;;  %v797_v7 = vld [vmem:[%s5617_s30 + $0x38] sm:$0xff] (!%p3898_p12) }
 0x118   : > { %s5658_s10 = scalar_lea.vmem %s6525_s3, %s3892_s27  ;;  %s767_s6 = scalar_lea.vmem %s6527_s1, %s5649_s17 }
 0x119   : > { %6526 = sst [smem:[#allocation36_spill]] %s5658_s10  ;;  %s771_s5 = scalar_lea.vmem %s6528_s2, %s5649_s17 }
 0x11a   : > { %s6529_s0 = sld [smem:[#allocation47_spill]]  ;;  %s779_s23 = scalar_lea.vmem %s6530_s8, %s5649_s17 }
 0x11b   : > { %s6531_s27 = sld [smem:[#allocation49_spill]]  ;;  %s6532_s3 = sshll.u32 %s5611_s24, 6 }
 0x11c   : > { %s5682_s10 = scalar_lea.vmem [#allocation13], %s6532_s3  ;;  %789 = sbr.rel (%p3898_p12) target bundleno = 291 (0x123), region = 100 }
 0x11d   : > { %798 = vst [vmem:[%s5682_s10] sm:$0xff] (!%p3898_p12), %v790_v0  ;;  %799 = vst [vmem:[%s5682_s10 + $0x8] sm:$0xff] (!%p3898_p12), %v791_v1 }
 0x11e   : > { %800 = vst [vmem:[%s5682_s10 + $0x10] sm:$0xff] (!%p3898_p12), %v792_v2  ;;  %801 = vst [vmem:[%s5682_s10 + $0x18] sm:$0xff] (!%p3898_p12), %v793_v3 }
 0x11f   : > { %802 = vst [vmem:[%s5682_s10 + $0x20] sm:$0xff] (!%p3898_p12), %v794_v4  ;;  %803 = vst [vmem:[%s5682_s10 + $0x28] sm:$0xff] (!%p3898_p12), %v795_v5 }
 0x120   : > { %s775_s29 = scalar_lea.vmem %s6529_s0, %s5649_s17  ;;  %804 = vst [vmem:[%s5682_s10 + $0x30] sm:$0xff] (!%p3898_p12), %v796_v6  ;;  %805 = vst [vmem:[%s5682_s10 + $0x38] sm:$0xff] (!%p3898_p12), %v797_v7 }
 0x121   : > { %s783_s11 = scalar_lea.vmem %s6531_s27, %s5649_s17 }
 0x123 PF: > { %v4395_v20 = vld [vmem:[%s5625_s9 + $0x4] ss:$24 sps:$4 sm:$0xff]   ;;  %v4397_v21 = vld [vmem:[%s5625_s9] ss:$24 sps:$4 sm:$0xff]   ;;  %v4398_v22 = vld [vmem:[%s5625_s9 + $0x34] ss:$24 sps:$4 sm:$0xff]  }
 0x124   : > { %v806_v8 = vld [vmem:[%s5682_s10] sm:$0xff]  ;;  %v807_v9 = vld [vmem:[%s5682_s10 + $0x8] sm:$0xff]  ;;  %1531 = vmatprep.subr.bf16.mxu0 %v4395_v20  ;;  %v4401_v24 = vld [vmem:[%s5625_s9 + $0x64] ss:$24 sps:$4 sm:$0xff]   ;;  %v882_v20 = vlaneseq  ;;  %vm5164_vm0 = vmmov 0   ;;  %vm1782_vm1 = vcmask 130048  }
 0x125   : > { %v816_v11 = vadd.f32 %v807_v9, %v806_v8  ;;  %v5706_v13 = vld [vmem:[%s5682_s10 + $0x10] sm:$0xff]  ;;  %v5709_v14 = vld [vmem:[%s5682_s10 + $0x18] sm:$0xff]  ;;  %1532 = vmatpush1.bf16.msra.mxu0 %v4397_v21  ;;  %v4404_v26 = vld [vmem:[%s5625_s9 + $0x94] ss:$24 sps:$4 sm:$0xff]   ;;  %s6539_s1 = sld [smem:[#allocation36_spill]]  ;;  %s6542_s8 = sld [smem:[#allocation34_spill]] }
 0x126   : > { %v810_v10 = vld [vmem:[%s5682_s10 + $0x20] sm:$0xff]  ;;  %v811_v12 = vld [vmem:[%s5682_s10 + $0x28] sm:$0xff]  ;;  %v819_v18 = vadd.f32 %v5709_v14, %v5706_v13  ;;  %1533 = vmatprep.subr.bf16.mxu0 %v4398_v22  ;;  %v4407_v28 = vld [vmem:[%s5625_s9 + $0xc4] ss:$24 sps:$4 sm:$0xff]   ;;  %s6543_s27 = sld [smem:[#allocation50_spill]]  ;;  %s3575_s2 = scalar_lea.sflag [#allocation4], %s5611_s24 }
 0x127   : > { %v822_v15 = vadd.f32 %v811_v12, %v810_v10  ;;  %v5712_v16 = vld [vmem:[%s5682_s10 + $0x30] sm:$0xff]  ;;  %v5715_v17 = vld [vmem:[%s5682_s10 + $0x38] sm:$0xff]  ;;  %817 = vadd.xlane.f32.xlu0 %v816_v11  ;;  %v4410_v30 = vld [vmem:[%s5625_s9 + $0xf4] ss:$24 sps:$4 sm:$0xff]   ;;  %s5165_s26 = smov [#allocation13]  }
 0x128   : > { %v825_v19 = vadd.f32 %v5715_v17, %v5712_v16  ;;  %v4400_v23 = vld [vmem:[%s5625_s9 + $0x30] ss:$24 sps:$4 sm:$0xff]   ;;  %v4403_v25 = vld [vmem:[%s5625_s9 + $0x60] ss:$24 sps:$4 sm:$0xff]   ;;  %v4413_v32 = vld [vmem:[%s5625_s9 + $0x124] ss:$24 sps:$4 sm:$0xff]  }
 0x129   : > { %823 = vadd.xlane.f32.xlu1 %v822_v15  ;;  %1534 = vmatpush1.bf16.msra.mxu0 %v4400_v23  ;;  %v4406_v27 = vld [vmem:[%s5625_s9 + $0x90] ss:$24 sps:$4 sm:$0xff]   ;;  %v4409_v29 = vld [vmem:[%s5625_s9 + $0xc0] ss:$24 sps:$4 sm:$0xff]   ;;  %v4416_v34 = vld [vmem:[%s5625_s9 + $0x154] ss:$24 sps:$4 sm:$0xff]  }
 0x12a   : > { %1535 = vmatprep.subr.bf16.mxu0 %v4401_v24  ;;  %v4412_v31 = vld [vmem:[%s5625_s9 + $0xf0] ss:$24 sps:$4 sm:$0xff]   ;;  %v4415_v33 = vld [vmem:[%s5625_s9 + $0x120] ss:$24 sps:$4 sm:$0xff]   ;;  %v4419_v36 = vld [vmem:[%s5625_s9 + $0x184] ss:$24 sps:$4 sm:$0xff]  }
 0x12b   : > { %820 = vadd.xlane.f32.xlu0 %v819_v18  ;;  %v4418_v35 = vld [vmem:[%s5625_s9 + $0x150] ss:$24 sps:$4 sm:$0xff]   ;;  %v4421_v37 = vld [vmem:[%s5625_s9 + $0x180] ss:$24 sps:$4 sm:$0xff]   ;;  %v4422_v38 = vld [vmem:[%s5625_s9 + $0x1b4] ss:$24 sps:$4 sm:$0xff]  }
 0x12c   : > { %v4424_v3 = vld [vmem:[%s5625_s9 + $0x1b0] ss:$24 sps:$4 sm:$0xff]   ;;  %v4425_v4 = vld [vmem:[%s5625_s9 + $0x1e4] ss:$24 sps:$4 sm:$0xff]   ;;  %v4427_v5 = vld [vmem:[%s5625_s9 + $0x1e0] ss:$24 sps:$4 sm:$0xff]  }
 0x12d   : > { %826 = vadd.xlane.f32.xlu1 %v825_v19  ;;  %1536 = vmatpush1.bf16.msra.mxu0 %v4403_v25  ;;  %v4428_v6 = vld [vmem:[%s5625_s9 + $0x214] ss:$24 sps:$4 sm:$0xff]   ;;  %v4430_v7 = vld [vmem:[%s5625_s9 + $0x210] ss:$24 sps:$4 sm:$0xff]   ;;  %p6545_p1 = scmp.ne.s32.totalorder %s6542_s8, 0  ;;  %s5019_s16 = sshll.u32 %s5165_s26, 4  ;;  %s5020_s16 = int_to_ptr.vmem [resolvable:$false] %s5019_s16 }
 0x12e   : > { %1537 = vmatprep.subr.bf16.mxu0 %v4404_v26  ;;  %v4436_v11 = vld [vmem:[%s5625_s9 + $0x270] ss:$24 sps:$4 sm:$0xff]   ;;  %s5021_s13 = scalar_lea.vmem %s5020_s16, 2048 }
 0x12f   : > { %v4442_v15 = vld [vmem:[%s5625_s9 + $0x2d0] ss:$24 sps:$4 sm:$0xff]  }
 0x131   : > { %1538 = vmatpush1.bf16.msra.mxu0 %v4406_v27  ;;  %v5790_v27 = vshrl.u32 %v882_v20, 7  ;;  %v4466_v20 = vld [vmem:[%s5625_s9 + $0x15c] ss:$24 sps:$4 sm:$0xff]  }
 0x132   : > { %1539 = vmatprep.subr.bf16.mxu0 %v4407_v28 }
 0x135   : > { %1540 = vmatpush1.bf16.msra.mxu0 %v4409_v29 }
 0x136   : > { %1541 = vmatprep.subr.bf16.mxu0 %v4410_v30 }
 0x139   : > { %1542 = vmatpush1.bf16.msra.mxu0 %v4412_v31  ;;  %v5793_v31 = vsub.s32 1, %v5790_v27 }
 0x13a   : > { %1543 = vmatprep.subr.bf16.mxu0 %v4413_v32  ;;  %v5796_v32 = vsub.s32 0, %v5790_v27 }
 0x13d   : > { %1544 = vmatpush1.bf16.msra.mxu0 %v4415_v33  ;;  %v814_v33 = vld [vmem:[%s771_s5] sm:$0x3] }
 0x13e   : > { %1545 = vmatprep.subr.bf16.mxu0 %v4416_v34 }
 0x141   : > { %1546 = vmatpush1.bf16.msra.mxu0 %v4418_v35  ;;  %v889_v35 = vrot.slane %v814_v33, %v5793_v31 }
 0x142   : > { %1547 = vmatprep.subr.bf16.mxu0 %v4419_v36  ;;  %v885_v36 = vrot.slane %v814_v33, %v5796_v32  ;;  %v4481_v33 = vld [vmem:[%s5625_s9 + $0x24c] ss:$24 sps:$4 sm:$0xff]  }
 0x145   : > { %1548 = vmatpush1.bf16.msra.mxu0 %v4421_v37  ;;  %v815_v37 = vld [vmem:[%s775_s29] sm:$0x3] }
 0x146   : > { %1549 = vmatprep.subr.bf16.mxu0 %v4422_v38 }
 0x149   : > { %1550 = vmatpush1.bf16.msra.mxu0 %v4424_v3  ;;  %v4448_v3 = vld [vmem:[%s5625_s9 + $0x3c] ss:$24 sps:$4 sm:$0xff]  }
 0x14a   : > { %1551 = vmatprep.subr.bf16.mxu0 %v4425_v4 }
 0x14d   : > { %1552 = vmatpush1.bf16.msra.mxu0 %v4427_v5 }
 0x14e   : > { %1553 = vmatprep.subr.bf16.mxu0 %v4428_v6  ;;  %v4446_v6 = vld [vmem:[%s5625_s9 + $0x38] ss:$24 sps:$4 sm:$0xff]  }
 0x151   : > { %1554 = vmatpush1.bf16.msra.mxu0 %v4430_v7  ;;  %v4451_v7 = vld [vmem:[%s5625_s9 + $0x6c] ss:$24 sps:$4 sm:$0xff]  }
 0x1b4   : > { %v818_v39 = vpop.xlane.xlu0 %817 }
 0x1b5   : > { %v829_v40 = vmul.f32 0.00390625, %v818_v39 }
 0x1b6   : > { %v824_v41 = vpop.xlane.xlu1 %823 }
 0x1b7   : > { %v831_v42 = vmul.f32 0.00390625, %v824_v41  ;;  %v5740_v43 = vsub.f32 %v806_v8, %v829_v40  ;;  %v5742_v44 = vsub.f32 %v807_v9, %v829_v40  ;;  %v4431_v8 = vld [vmem:[%s5625_s9 + $0x244] ss:$24 sps:$4 sm:$0xff]   ;;  %v4433_v9 = vld [vmem:[%s5625_s9 + $0x240] ss:$24 sps:$4 sm:$0xff]  }
 0x1b8   : > { %v821_v47 = vpop.xlane.xlu0 %820  ;;  %1555 = vmatprep.subr.bf16.mxu0 %v4431_v8 }
 0x1b9   : > { %v5744_v45 = vsub.f32 %v810_v10, %v831_v42  ;;  %v5746_v46 = vsub.f32 %v811_v12, %v831_v42  ;;  %v830_v48 = vmul.f32 0.00390625, %v821_v47  ;;  %v841_v50 = vmul.f32 %v5740_v43, %v5740_v43  ;;  %v4434_v10 = vld [vmem:[%s5625_s9 + $0x274] ss:$24 sps:$4 sm:$0xff]   ;;  %1556 = vmatpush1.bf16.msra.mxu0 %v4433_v9  ;;  %v4437_v12 = vld [vmem:[%s5625_s9 + $0x2a4] ss:$24 sps:$4 sm:$0xff]  }
 0x1ba   : > { %v827_v49 = vpop.xlane.xlu1 %826  ;;  %v842_v51 = vmul.f32 %v5742_v44, %v5742_v44  ;;  %1557 = vmatprep.subr.bf16.mxu0 %v4434_v10  ;;  %v908_v42 = vrot.slane %v815_v37, %v5793_v31  ;;  %v4449_v10 = vld [vmem:[%s5625_s9 + $0x68] ss:$24 sps:$4 sm:$0xff]  }
 0x1bb   : > { %v832_v52 = vmul.f32 0.00390625, %v827_v49  ;;  %v845_v53 = vmul.f32 %v5744_v45, %v5744_v45  ;;  %v846_v54 = vmul.f32 %v5746_v46, %v5746_v46  ;;  %v5757_v55 = vsub.f32 %v5706_v13, %v830_v48  ;;  %v4439_v13 = vld [vmem:[%s5625_s9 + $0x2a0] ss:$24 sps:$4 sm:$0xff]  }
 0x1bc   : > { %v5760_v56 = vsub.f32 %v5709_v14, %v830_v48  ;;  %v849_v57 = vadd.f32 %v842_v51, %v841_v50  ;;  %v4440_v14 = vld [vmem:[%s5625_s9 + $0x2d4] ss:$24 sps:$4 sm:$0xff]   ;;  %v904_v48 = vrot.slane %v815_v37, %v5796_v32 }
 0x1bd   : > { %v5763_v58 = vsub.f32 %v5712_v16, %v832_v52  ;;  %v5766_v59 = vsub.f32 %v5715_v17, %v832_v52  ;;  %v855_v60 = vadd.f32 %v846_v54, %v845_v53  ;;  %v843_v61 = vmul.f32 %v5757_v55, %v5757_v55  ;;  %1558 = vmatpush1.bf16.msra.mxu0 %v4436_v11  ;;  %v4445_v16 = vld [vmem:[%s5625_s9 + $0xc] ss:$24 sps:$4 sm:$0xff]  }
 0x1be   : > { %850 = vadd.xlane.f32.xlu0 %v849_v57  ;;  %v844_v62 = vmul.f32 %v5760_v56, %v5760_v56  ;;  %1559 = vmatprep.subr.bf16.mxu0 %v4437_v12  ;;  %v4454_v12 = vld [vmem:[%s5625_s9 + $0x9c] ss:$24 sps:$4 sm:$0xff]   ;;  %v4487_v37 = vld [vmem:[%s5625_s9 + $0x2ac] ss:$24 sps:$4 sm:$0xff]  }
 0x1bf   : > { %v847_v63 = vmul.f32 %v5763_v58, %v5763_v58  ;;  %v848_v0 = vmul.f32 %v5766_v59, %v5766_v59 }
 0x1c0   : > { %v852_v1 = vadd.f32 %v844_v62, %v843_v61 }
 0x1c1   : > { %v858_v2 = vadd.f32 %v848_v0, %v847_v63  ;;  %1560 = vmatpush1.bf16.msra.mxu0 %v4439_v13  ;;  %v4452_v13 = vld [vmem:[%s5625_s9 + $0x98] ss:$24 sps:$4 sm:$0xff]  }
 0x1c2   : > { %856 = vadd.xlane.f32.xlu0 %v855_v60  ;;  %853 = vadd.xlane.f32.xlu1 %v852_v1 }
 0x1c3   : > { %1561 = vmatprep.subr.bf16.mxu0 %v4440_v14  ;;  %v4457_v14 = vld [vmem:[%s5625_s9 + $0xcc] ss:$24 sps:$4 sm:$0xff]  }
 0x1c5   : > { %1562 = vmatpush1.bf16.msra.mxu0 %v4442_v15  ;;  %v4455_v15 = vld [vmem:[%s5625_s9 + $0xc8] ss:$24 sps:$4 sm:$0xff]  }
 0x1c6   : > { %859 = vadd.xlane.f32.xlu1 %v858_v2  ;;  %1584 = vmatprep.subr.bf16.mxu0 %v4445_v16  ;;  %v4460_v16 = vld [vmem:[%s5625_s9 + $0xfc] ss:$24 sps:$4 sm:$0xff]  }
 0x24b   : > { %v851_v17 = vpop.xlane.xlu0 %850 }
 0x24c   : > { %v861_v18 = vmul.f32 0.00390625, %v851_v17  ;;  %v4458_v17 = vld [vmem:[%s5625_s9 + $0xf8] ss:$24 sps:$4 sm:$0xff]  }
 0x24e   : > { %v865_v19 = vadd.f32 1e-05, %v861_v18  ;;  %v4463_v18 = vld [vmem:[%s5625_s9 + $0x12c] ss:$24 sps:$4 sm:$0xff]  }
 0x24f   : > { %v854_v21 = vpop.xlane.xlu1 %853  ;;  %v857_v22 = vpop.xlane.xlu0 %856 }
 0x250   : > { %4779 = vrsqrt.f32 %v865_v19  ;;  %v862_v23 = vmul.f32 0.00390625, %v854_v21  ;;  %v863_v24 = vmul.f32 0.00390625, %v857_v22  ;;  %v4461_v19 = vld [vmem:[%s5625_s9 + $0x128] ss:$24 sps:$4 sm:$0xff]   ;;  %v4464_v21 = vld [vmem:[%s5625_s9 + $0x158] ss:$24 sps:$4 sm:$0xff]  }
 0x251   : > { %v4469_v22 = vld [vmem:[%s5625_s9 + $0x18c] ss:$24 sps:$4 sm:$0xff]  }
 0x252   : > { %v866_v25 = vadd.f32 1e-05, %v862_v23  ;;  %v867_v26 = vadd.f32 1e-05, %v863_v24  ;;  %v4467_v23 = vld [vmem:[%s5625_s9 + $0x188] ss:$24 sps:$4 sm:$0xff]  }
 0x253   : > { %v860_v28 = vpop.xlane.xlu1 %859  ;;  %v4472_v24 = vld [vmem:[%s5625_s9 + $0x1bc] ss:$24 sps:$4 sm:$0xff]  }
 0x254   : > { %4781 = vrsqrt.f32 %v866_v25  ;;  %v864_v29 = vmul.f32 0.00390625, %v860_v28  ;;  %v4470_v25 = vld [vmem:[%s5625_s9 + $0x1b8] ss:$24 sps:$4 sm:$0xff]   ;;  %v4473_v28 = vld [vmem:[%s5625_s9 + $0x1e8] ss:$24 sps:$4 sm:$0xff]  }
 0x255   : > { %4783 = vrsqrt.f32 %v867_v26  ;;  %v4475_v26 = vld [vmem:[%s5625_s9 + $0x1ec] ss:$24 sps:$4 sm:$0xff]  }
 0x256   : > { %v868_v30 = vadd.f32 1e-05, %v864_v29  ;;  %v4478_v29 = vld [vmem:[%s5625_s9 + $0x21c] ss:$24 sps:$4 sm:$0xff]  }
 0x258   : > { %4785 = vrsqrt.f32 %v868_v30  ;;  %v4476_v30 = vld [vmem:[%s5625_s9 + $0x218] ss:$24 sps:$4 sm:$0xff]  }
 0x25a   : > { %v4780_v34 = vpop.eup %4779 }
 0x25b   : > { %v874_v38 = vmul.f32 %v4780_v34, %v5742_v44  ;;  %v873_v39 = vmul.f32 %v4780_v34, %v5740_v43  ;;  %v4479_v34 = vld [vmem:[%s5625_s9 + $0x248] ss:$24 sps:$4 sm:$0xff]  }
 0x25d   : > { %v893_v41 = vmul.f32 %v889_v35, %v874_v38  ;;  %v892_v47 = vmul.f32 %v885_v36, %v873_v39  ;;  %v4485_v38 = vld [vmem:[%s5625_s9 + $0x2a8] ss:$24 sps:$4 sm:$0xff]   ;;  %v4490_v39 = vld [vmem:[%s5625_s9 + $0x2dc] ss:$24 sps:$4 sm:$0xff]  }
 0x25e   : > { %v4782_v40 = vpop.eup %4781 }
 0x25f   : > { %v4784_v49 = vpop.eup %4783  ;;  %v876_v50 = vmul.f32 %v4782_v40, %v5760_v56  ;;  %v875_v51 = vmul.f32 %v4782_v40, %v5757_v55  ;;  %v912_v43 = vadd.f32 %v908_v42, %v893_v41  ;;  %v911_v57 = vadd.f32 %v904_v48, %v892_v47  ;;  %v4488_v40 = vld [vmem:[%s5625_s9 + $0x2d8] ss:$24 sps:$4 sm:$0xff]   ;;  %v4493_v41 = vld [vmem:[%s5625_s9 + $0x14] ss:$24 sps:$4 sm:$0xff]   ;;  %v4496_v47 = vld [vmem:[%s5625_s9 + $0x44] ss:$24 sps:$4 sm:$0xff]  }
 0x260   : > { %v878_v52 = vmul.f32 %v4784_v49, %v5746_v46  ;;  %v877_v56 = vmul.f32 %v4784_v49, %v5744_v45  ;;  %v4443_v46 = vld [vmem:[%s5625_s9 + $0x8] ss:$24 sps:$4 sm:$0xff]   ;;  %v4499_v49 = vld [vmem:[%s5625_s9 + $0x74] ss:$24 sps:$4 sm:$0xff]  }
 0x261   : > { %v895_v53 = vmul.f32 %v889_v35, %v876_v50  ;;  %v894_v44 = vmul.f32 %v885_v36, %v875_v51  ;;  %v4497_v50 = vld [vmem:[%s5625_s9 + $0x70] ss:$24 sps:$4 sm:$0xff]   ;;  %v4502_v51 = vld [vmem:[%s5625_s9 + $0xa4] ss:$24 sps:$4 sm:$0xff]  }
 0x262   : > { %v4786_v54 = vpop.eup %4785  ;;  %v897_v60 = vmul.f32 %v889_v35, %v878_v52  ;;  %v4500_v52 = vld [vmem:[%s5625_s9 + $0xa0] ss:$24 sps:$4 sm:$0xff]  }
 0x263   : > { %v914_v61 = vadd.f32 %v908_v42, %v895_v53  ;;  %v913_v62 = vadd.f32 %v904_v48, %v894_v44  ;;  %v880_v63 = vmul.f32 %v4786_v54, %v5766_v59  ;;  %v879_v0 = vmul.f32 %v4786_v54, %v5763_v58  ;;  %v4505_v53 = vld [vmem:[%s5625_s9 + $0xd4] ss:$24 sps:$4 sm:$0xff]   ;;  %v4503_v44 = vld [vmem:[%s5625_s9 + $0xd0] ss:$24 sps:$4 sm:$0xff]   ;;  %v4508_v54 = vld [vmem:[%s5625_s9 + $0x104] ss:$24 sps:$4 sm:$0xff]  }
 0x264   : > { %v916_v5 = vadd.f32 %v908_v42, %v897_v60  ;;  %v896_v58 = vmul.f32 %v885_v36, %v877_v56  ;;  %v4509_v60 = vld [vmem:[%s5625_s9 + $0x130] ss:$24 sps:$4 sm:$0xff]   ;;  %v4520_v56 = vld [vmem:[%s5625_s9 + $0x1c4] ss:$24 sps:$4 sm:$0xff]  }
 0x265   : > { %v5820_v55 = vpack.c.bf16 %v914_v61, %v912_v43  ;;  %v5823_v1 = vpack.c.bf16 %v913_v62, %v911_v57  ;;  %v899_v2 = vmul.f32 %v889_v35, %v880_v63  ;;  %v898_v4 = vmul.f32 %v885_v36, %v879_v0  ;;  %v4484_v35 = vld [vmem:[%s5625_s9 + $0x27c] ss:$24 sps:$4 sm:$0xff]   ;;  %v4482_v36 = vld [vmem:[%s5625_s9 + $0x278] ss:$24 sps:$4 sm:$0xff]  }
 0x266   : > { %v915_v9 = vadd.f32 %v904_v48, %v896_v58  ;;  %v4506_v43 = vld [vmem:[%s5625_s9 + $0x100] ss:$24 sps:$4 sm:$0xff]   ;;  %v4511_v57 = vld [vmem:[%s5625_s9 + $0x134] ss:$24 sps:$4 sm:$0xff]   ;;  %v4514_v61 = vld [vmem:[%s5625_s9 + $0x164] ss:$24 sps:$4 sm:$0xff]  }
 0x267   : > { %1563 = vmatprep.mubr.bf16.mxu0 %v5820_v55  ;;  %v918_v59 = vadd.f32 %v908_v42, %v899_v2  ;;  %v917_v8 = vadd.f32 %v904_v48, %v898_v4  ;;  %v4491_v42 = vld [vmem:[%s5625_s9 + $0x10] ss:$24 sps:$4 sm:$0xff]   ;;  %v4494_v48 = vld [vmem:[%s5625_s9 + $0x40] ss:$24 sps:$4 sm:$0xff]   ;;  %v4517_v63 = vld [vmem:[%s5625_s9 + $0x194] ss:$24 sps:$4 sm:$0xff]  }
 0x268   : > { %1564 = vmatmul.mubr.bf16.vlgmr.msra.gmra.mrb[0].mxu0 %v5823_v1  ;;  %v4512_v62 = vld [vmem:[%s5625_s9 + $0x160] ss:$24 sps:$4 sm:$0xff]   ;;  %v4515_v0 = vld [vmem:[%s5625_s9 + $0x190] ss:$24 sps:$4 sm:$0xff]   ;;  %v4532_v58 = vld [vmem:[%s5625_s9 + $0x284] ss:$24 sps:$4 sm:$0xff]  }
 0x269   : > { %1585 = vmatpush1.bf16.msra.mxu0 %v4443_v46  ;;  %v5828_v45 = vpack.c.bf16 %v918_v59, %v916_v5  ;;  %v5834_v11 = vpack.c.bf16 %v917_v8, %v915_v9  ;;  %v4523_v46 = vld [vmem:[%s5625_s9 + $0x1f4] ss:$24 sps:$4 sm:$0xff]   ;;  %v4521_v2 = vld [vmem:[%s5625_s9 + $0x1f0] ss:$24 sps:$4 sm:$0xff]   ;;  %v4524_v4 = vld [vmem:[%s5625_s9 + $0x220] ss:$24 sps:$4 sm:$0xff]  }
 0x26a   : > { %1586 = vmatprep.subr.bf16.mxu0 %v4448_v3  ;;  %v4526_v3 = vld [vmem:[%s5625_s9 + $0x224] ss:$24 sps:$4 sm:$0xff]   ;;  %v4529_v5 = vld [vmem:[%s5625_s9 + $0x254] ss:$24 sps:$4 sm:$0xff]   ;;  %v4527_v59 = vld [vmem:[%s5625_s9 + $0x250] ss:$24 sps:$4 sm:$0xff]  }
 0x26b   : > { %1573 = vmatprep.mubr.bf16.mxu0 %v5828_v45  ;;  %v4533_v8 = vld [vmem:[%s5625_s9 + $0x2b0] ss:$24 sps:$4 sm:$0xff]   ;;  %v4538_v9 = vld [vmem:[%s5625_s9 + $0x2e4] ss:$24 sps:$4 sm:$0xff]  }
 0x26d   : > { %1587 = vmatpush1.bf16.msra.mxu0 %v4446_v6  ;;  %v4530_v6 = vld [vmem:[%s5625_s9 + $0x280] ss:$24 sps:$4 sm:$0xff]  }
 0x26e   : > { %1588 = vmatprep.subr.bf16.mxu0 %v4451_v7  ;;  %v4535_v7 = vld [vmem:[%s5625_s9 + $0x2b4] ss:$24 sps:$4 sm:$0xff]  }
 0x270   : > { %1574 = vmatmul.mubr.bf16.gmra.mrb[4].mxu0 %v5834_v11 }
 0x271   : > { %1589 = vmatpush1.bf16.msra.mxu0 %v4449_v10  ;;  %1616 = vmatprep.mubr.bf16.mxu0 %v5820_v55  ;;  %v4536_v10 = vld [vmem:[%s5625_s9 + $0x2e0] ss:$24 sps:$4 sm:$0xff]  }
 0x272   : > { %1590 = vmatprep.subr.bf16.mxu0 %v4454_v12  ;;  %v5163_v12 = vmov 0.0  }
 0x273   : > { %4188 = vmatprep.subr.bf16.mxu1 %v5163_v12  ;;  %4190 = vmatprep.mubr.msk.bf16.mxu1 %vm5164_vm0, %v5163_v12 }
 0x275   : > { %1591 = vmatpush1.bf16.msra.mxu0 %v4452_v13  ;;  %v1019_v13 = vld [vmem:[%s5631_s19] sm:$0x3f] }
 0x276   : > { %1592 = vmatprep.subr.bf16.mxu0 %v4457_v14  ;;  %v1024_v14 = vrot.slane %v1019_v13, %v5796_v32 }
 0x279   : > { %1593 = vmatpush1.bf16.msra.mxu0 %v4455_v15 }
 0x27a   : > { %1594 = vmatprep.subr.bf16.mxu0 %v4460_v16  ;;  %v1028_v16 = vrot.slane %v1019_v13, %v5793_v31 }
 0x27d   : > { %1595 = vmatpush1.bf16.msra.mxu0 %v4458_v17 }
 0x27e   : > { %1596 = vmatprep.subr.bf16.mxu0 %v4463_v18 }
 0x281   : > { %1597 = vmatpush1.bf16.msra.mxu0 %v4461_v19 }
 0x282   : > { %1598 = vmatprep.subr.bf16.mxu0 %v4466_v20 }
 0x285   : > { %1599 = vmatpush1.bf16.msra.mxu0 %v4464_v21 }
 0x286   : > { %1600 = vmatprep.subr.bf16.mxu0 %v4469_v22 }
 0x289   : > { %1601 = vmatpush1.bf16.msra.mxu0 %v4467_v23 }
 0x28a   : > { %1602 = vmatprep.subr.bf16.mxu0 %v4472_v24 }
 0x28d   : > { %1603 = vmatpush1.bf16.msra.mxu0 %v4470_v25 }
 0x28e   : > { %1604 = vmatprep.subr.bf16.mxu0 %v4475_v26 }
 0x291   : > { %1605 = vmatpush1.bf16.msra.mxu0 %v4473_v28 }
 0x292   : > { %1606 = vmatprep.subr.bf16.mxu0 %v4478_v29 }
 0x295   : > { %1607 = vmatpush1.bf16.msra.mxu0 %v4476_v30 }
 0x296   : > { %1608 = vmatprep.subr.bf16.mxu0 %v4481_v33 }
 0x299   : > { %1609 = vmatpush1.bf16.msra.mxu0 %v4479_v34 }
 0x29a   : > { %1610 = vmatprep.subr.bf16.mxu0 %v4484_v35 }
 0x29d   : > { %1611 = vmatpush1.bf16.msra.mxu0 %v4482_v36  ;;  %v1031_v36 = vsub.s32 2, %v5790_v27 }
 0x29e   : > { %1612 = vmatprep.subr.bf16.mxu0 %v4487_v37  ;;  %v1035_v37 = vsub.s32 3, %v5790_v27 }
 0x2a1   : > { %1613 = vmatpush1.bf16.msra.mxu0 %v4485_v38  ;;  %v1032_v38 = vrot.slane %v1019_v13, %v1031_v36 }
 0x2a2   : > { %1614 = vmatprep.subr.bf16.mxu0 %v4490_v39 }
 0x2a5   : > { %1615 = vmatpush1.bf16.msra.mxu0 %v4488_v40  ;;  %v1036_v40 = vrot.slane %v1019_v13, %v1035_v37 }
 0x2a6   : > { %1637 = vmatprep.subr.bf16.mxu0 %v4493_v41 }
 0x2a8   : > { %1617 = vmatmul.mubr.bf16.vlgmr.msra.gmra.mrb[8].mxu0 %v5823_v1 }
 0x2a9   : > { %1626 = vmatprep.mubr.bf16.mxu0 %v5828_v45  ;;  %1638 = vmatpush1.bf16.msra.mxu0 %v4491_v42 }
 0x2aa   : > { %1639 = vmatprep.subr.bf16.mxu0 %v4496_v47 }
 0x2ad   : > { %1640 = vmatpush1.bf16.msra.mxu0 %v4494_v48 }
 0x2ae   : > { %1641 = vmatprep.subr.bf16.mxu0 %v4499_v49 }
 0x2b0   : > { %1627 = vmatmul.mubr.bf16.gmra.mrb[12].mxu0 %v5834_v11 }
 0x2b1   : > { %1642 = vmatpush1.bf16.msra.mxu0 %v4497_v50  ;;  %1669 = vmatprep.mubr.bf16.mxu0 %v5820_v55  ;;  %v4518_v55 = vld [vmem:[%s5625_s9 + $0x1c0] ss:$24 sps:$4 sm:$0xff]   ;;  %s6535_s9 = sld [smem:[#allocation41_spill]] }
 0x2b2   : > { %1643 = vmatprep.subr.bf16.mxu0 %v4502_v51 }
 0x2b5   : > { %1644 = vmatpush1.bf16.msra.mxu0 %v4500_v52 }
 0x2b6   : > { %1645 = vmatprep.subr.bf16.mxu0 %v4505_v53 }
 0x2b7   : > { %s6536_s19 = scalar_lea.vmem %s6535_s9, %s5649_s17 }
 0x2b9   : > { %1646 = vmatpush1.bf16.msra.mxu0 %v4503_v44 }
 0x2ba   : > { %1647 = vmatprep.subr.bf16.mxu0 %v4508_v54 }
 0x2bd   : > { %1648 = vmatpush1.bf16.msra.mxu0 %v4506_v43 }
 0x2be   : > { %1649 = vmatprep.subr.bf16.mxu0 %v4511_v57 }
 0x2c1   : > { %1650 = vmatpush1.bf16.msra.mxu0 %v4509_v60 }
 0x2c2   : > { %1651 = vmatprep.subr.bf16.mxu0 %v4514_v61 }
 0x2c5   : > { %1652 = vmatpush1.bf16.msra.mxu0 %v4512_v62 }
 0x2c6   : > { %1653 = vmatprep.subr.bf16.mxu0 %v4517_v63 }
 0x2c9   : > { %1654 = vmatpush1.bf16.msra.mxu0 %v4515_v0 }
 0x2ca   : > { %1655 = vmatprep.subr.bf16.mxu0 %v4520_v56 }
 0x2cd   : > { %1656 = vmatpush1.bf16.msra.mxu0 %v4518_v55  ;;  %v1039_v55 = vsub.s32 4, %v5790_v27 }
 0x2ce   : > { %1657 = vmatprep.subr.bf16.mxu0 %v4523_v46  ;;  %v1043_v46 = vsub.s32 5, %v5790_v27 }
 0x2d1   : > { %1658 = vmatpush1.bf16.msra.mxu0 %v4521_v2  ;;  %v1040_v2 = vrot.slane %v1019_v13, %v1039_v55 }
 0x2d2   : > { %1659 = vmatprep.subr.bf16.mxu0 %v4526_v3 }
 0x2d5   : > { %1660 = vmatpush1.bf16.msra.mxu0 %v4524_v4  ;;  %v1044_v4 = vrot.slane %v1019_v13, %v1043_v46 }
 0x2d6   : > { %1661 = vmatprep.subr.bf16.mxu0 %v4529_v5 }
 0x2d9   : > { %1662 = vmatpush1.bf16.msra.mxu0 %v4527_v59 }
 0x2da   : > { %1663 = vmatprep.subr.bf16.mxu0 %v4532_v58 }
 0x2dd   : > { %1664 = vmatpush1.bf16.msra.mxu0 %v4530_v6 }
 0x2de   : > { %1665 = vmatprep.subr.bf16.mxu0 %v4535_v7 }
 0x2e1   : > { %1666 = vmatpush1.bf16.msra.mxu0 %v4533_v8 }
 0x2e2   : > { %1667 = vmatprep.subr.bf16.mxu0 %v4538_v9 }
 0x2e5   : > { %1668 = vmatpush1.bf16.msra.mxu0 %v4536_v10 }
 0x2e8   : > { %1670 = vmatmul.mubr.bf16.vlgmr.msra.gmra.mrb[16].mxu0 %v5823_v1 }
 0x2e9   : > { %1679 = vmatprep.mubr.bf16.mxu0 %v5828_v45 }
 0x2f0   : > { %1680 = vmatmul.mubr.bf16.gmra.mrb[20].mxu0 %v5834_v11 }
 0x33b   : > { %v1565_v15 = vpop.f32.mrb[0].mxu0 }
 0x33c   : > { %v1567_v17 = vpop.f32.mrb[1].mxu0  ;;  %v1566_v1 = vadd.f32 %v1565_v15, %v1024_v14 }
 0x33d   : > { %v1569_v18 = vpop.f32.mrb[2].mxu0  ;;  %v5909_v20 = vadd.f32 %v1567_v17, %v1028_v16 }
 0x33e   : > { %v1570_v19 = vadd.f32 %v1569_v18, %v1024_v14  ;;  %v1571_v45 = vpop.f32.mrb[3].mxu0 }
 0x33f   : > { %v5911_v11 = vadd.f32 %v1571_v45, %v1028_v16 }
 0x340   : > { %v1690_v21 = vpack.c.bf16 %v1570_v19, %v1566_v1 }
 0x341   : > { %v1917_v22 = vpack.c.bf16 %v5911_v11, %v5909_v20 }
 0x343   : > { %v1575_v23 = vpop.f32.mrb[4].mxu0 }
 0x344   : > { %v1577_v24 = vpop.f32.mrb[5].mxu0  ;;  %v1576_v26 = vadd.f32 %v1575_v23, %v1024_v14 }
 0x345   : > { %v1579_v25 = vpop.f32.mrb[6].mxu0  ;;  %v5915_v30 = vadd.f32 %v1577_v24, %v1028_v16 }
 0x346   : > { %v1580_v28 = vadd.f32 %v1579_v25, %v1024_v14  ;;  %v1581_v29 = vpop.f32.mrb[7].mxu0 }
 0x347   : > { %v5917_v33 = vadd.f32 %v1581_v29, %v1028_v16 }
 0x348   : > { %v1691_v34 = vpack.c.bf16 %v1580_v28, %v1576_v26 }
 0x349   : > { %v1918_v35 = vpack.c.bf16 %v5917_v33, %v5915_v30 }
 0x37b   : > { %v1618_v39 = vpop.f32.mrb[8].mxu0 }
 0x37c   : > { %v1620_v41 = vpop.f32.mrb[9].mxu0  ;;  %v1619_v47 = vadd.f32 %v1618_v39, %v1032_v38 }
 0x37d   : > { %v1622_v42 = vpop.f32.mrb[10].mxu0  ;;  %v5927_v50 = vadd.f32 %v1620_v41, %v1036_v40 }
 0x37e   : > { %v1623_v48 = vadd.f32 %v1622_v42, %v1032_v38  ;;  %v1624_v49 = vpop.f32.mrb[11].mxu0 }
 0x37f   : > { %v5929_v51 = vadd.f32 %v1624_v49, %v1036_v40 }
 0x380   : > { %v1692_v52 = vpack.c.bf16 %v1623_v48, %v1619_v47 }
 0x381   : > { %v1919_v53 = vpack.c.bf16 %v5929_v51, %v5927_v50 }
 0x382   : > { %4189 = vmatpush3.bf16.xpose.msra.mxu1 %v1692_v52 }
 0x383   : > { %v1628_v44 = vpop.f32.mrb[12].mxu0  ;;  %4194 = vmatprep.subr.bf16.mxu1 %v5163_v12 }
 0x384   : > { %v1630_v54 = vpop.f32.mrb[13].mxu0  ;;  %v1629_v57 = vadd.f32 %v1628_v44, %v1032_v38 }
 0x385   : > { %v1632_v43 = vpop.f32.mrb[14].mxu0  ;;  %v5934_v62 = vadd.f32 %v1630_v54, %v1036_v40 }
 0x386   : > { %v1633_v60 = vadd.f32 %v1632_v43, %v1032_v38  ;;  %v1634_v61 = vpop.f32.mrb[15].mxu0 }
 0x387   : > { %v5936_v63 = vadd.f32 %v1634_v61, %v1036_v40 }
 0x388   : > { %v1693_v0 = vpack.c.bf16 %v1633_v60, %v1629_v57 }
 0x389   : > { %v1920_v56 = vpack.c.bf16 %v5936_v63, %v5934_v62  ;;  %4191 = vmatmul.mubr.bf16.vlgmr.msra.gmra.mrb[0].mxu1 %v1690_v21 }
 0x38a   : > { %4195 = vmatpush3.bf16.xpose.msra.mxu1 %v1693_v0  ;;  %4196 = vmatprep.mubr.msk.bf16.mxu1 %vm5164_vm0, %v5163_v12 }
 0x38b   : > { %4200 = vmatprep.subr.bf16.mxu1 %v5163_v12 }
 0x391   : > { %4197 = vmatmul.mubr.bf16.vlgmr.msra.gmra.mrb[4].mxu1 %v1691_v34 }
 0x392   : > { %4202 = vmatprep.mubr.msk.bf16.mxu1 %vm5164_vm0, %v5163_v12 }
 0x3bb   : > { %v1671_v3 = vpop.f32.mrb[16].mxu0 }
 0x3bc   : > { %v1673_v5 = vpop.f32.mrb[17].mxu0  ;;  %v1672_v58 = vadd.f32 %v1671_v3, %v1040_v2 }
 0x3bd   : > { %v1675_v59 = vpop.f32.mrb[18].mxu0  ;;  %v5947_v8 = vadd.f32 %v1673_v5, %v1044_v4 }
 0x3be   : > { %v1676_v6 = vadd.f32 %v1675_v59, %v1040_v2  ;;  %v1677_v7 = vpop.f32.mrb[19].mxu0 }
 0x3bf   : > { %v5949_v9 = vadd.f32 %v1677_v7, %v1044_v4 }
 0x3c0   : > { %v1694_v10 = vpack.c.bf16 %v1676_v6, %v1672_v58 }
 0x3c1   : > { %v1921_v14 = vpack.c.bf16 %v5949_v9, %v5947_v8 }
 0x3c2   : > { %4201 = vmatpush3.bf16.msra.mxu1 %v1694_v10 }
 0x3c3   : > { %v1681_v15 = vpop.f32.mrb[20].mxu0  ;;  %4206 = vmatprep.subr.bf16.mxu1 %v5163_v12 }
 0x3c4   : > { %v5954_v16 = vadd.f32 %v1681_v15, %v1040_v2  ;;  %v1683_v13 = vpop.f32.mrb[21].mxu0 }
 0x3c5   : > { %v5956_v17 = vadd.f32 %v1683_v13, %v1044_v4  ;;  %v1685_v18 = vpop.f32.mrb[22].mxu0 }
 0x3c6   : > { %v5958_v1 = vadd.f32 %v1685_v18, %v1040_v2  ;;  %v1687_v19 = vpop.f32.mrb[23].mxu0 }
 0x3c7   : > { %v5960_v45 = vadd.f32 %v1687_v19, %v1044_v4 }
 0x3c8   : > { %v1695_v21 = vpack.c.bf16 %v5958_v1, %v5954_v16 }
 0x3c9   : > { %v1922_v23 = vpack.c.bf16 %v5960_v45, %v5956_v17 }
 0x45c   : > { %v1730_v24 = vpop.f32.mrb[0].mxu1 }
 0x45d   : > { %v1778_v25 = vmul.f32 0.088388346, %v1730_v24  ;;  %v4192_v26 = vpop.f32.mrb[1].mxu1 }
 0x45e   : > { %v1733_v28 = vpop.f32.mrb[2].mxu1 }
 0x45f   : > { %v1779_v29 = vmul.f32 0.088388346, %v1733_v28  ;;  %v4193_v34 = vpop.f32.mrb[3].mxu1  ;;  %v1783_v38 = vsel %vm1782_vm1, %v1778_v25, -inf }
 0x460   : > { %1784 = vmax.xlane.f32.xlu0 %v1783_v38 }
 0x461   : > { %v1786_v39 = vsel %vm1782_vm1, %v1779_v29, -inf }
 0x462   : > { %1787 = vmax.xlane.f32.xlu1 %v1786_v39 }
 0x464   : > { %v1771_v40 = vpop.f32.mrb[4].mxu1 }
 0x465   : > { %v1780_v41 = vmul.f32 0.088388346, %v1771_v40  ;;  %v4198_v42 = vpop.f32.mrb[5].mxu1 }
 0x466   : > { %v1774_v47 = vpop.f32.mrb[6].mxu1 }
 0x467   : > { %v1781_v48 = vmul.f32 0.088388346, %v1774_v47  ;;  %v4199_v49 = vpop.f32.mrb[7].mxu1  ;;  %v1789_v52 = vsel %vm1782_vm1, %v1780_v41, -inf }
 0x468   : > { %1790 = vmax.xlane.f32.xlu0 %v1789_v52 }
 0x469   : > { %v1792_v44 = vsel %vm1782_vm1, %v1781_v48, -inf }
 0x46a   : > { %1793 = vmax.xlane.f32.xlu1 %v1792_v44 }
 0x4ed   : > { %v1785_v54 = vpop.xlane.xlu0 %1784 }
 0x4ee   : > { %v1795_v43 = vsub.f32 %v1778_v25, %v1785_v54 }
 0x4ef   : > { %v1788_v57 = vpop.xlane.xlu1 %1787 }
 0x4f0   : > { %v1799_v60 = vmul.f32 1.442695, %v1795_v43  ;;  %v1796_v61 = vsub.f32 %v1779_v29, %v1788_v57 }
 0x4f2   : > { %4787 = vpow2.f32 %v1799_v60  ;;  %v1801_v0 = vmul.f32 1.442695, %v1796_v61 }
 0x4f4   : > { %4789 = vpow2.f32 %v1801_v0 }
 0x4f5   : > { %v1791_v55 = vpop.xlane.xlu0 %1790 }
 0x4f6   : > { %v1797_v46 = vsub.f32 %v1780_v41, %v1791_v55 }
 0x4f7   : > { %v1794_v2 = vpop.xlane.xlu1 %1793 }
 0x4f8   : > { %v1803_v3 = vmul.f32 1.442695, %v1797_v46  ;;  %v1798_v4 = vsub.f32 %v1781_v48, %v1794_v2 }
 0x4fa   : > { %4791 = vpow2.f32 %v1803_v3  ;;  %v1805_v5 = vmul.f32 1.442695, %v1798_v4 }
 0x4fc   : > { %v4788_v59 = vpop.eup %4787  ;;  %4793 = vpow2.f32 %v1805_v5 }
 0x4fd   : > { %v1807_v58 = vsel %vm1782_vm1, %v4788_v59, 0.0 }
 0x4fe   : > { %v4790_v6 = vpop.eup %4789  ;;  %1808 = vadd.xlane.f32.xlu0 %v1807_v58 }
 0x4ff   : > { %v1810_v7 = vsel %vm1782_vm1, %v4790_v6, 0.0 }
 0x500   : > { %1811 = vadd.xlane.f32.xlu1 %v1810_v7 }
 0x504   : > { %v4792_v10 = vpop.eup %4791 }
 0x505   : > { %v1813_v15 = vsel %vm1782_vm1, %v4792_v10, 0.0 }
 0x506   : > { %v4794_v13 = vpop.eup %4793  ;;  %1814 = vadd.xlane.f32.xlu0 %v1813_v15 }
 0x507   : > { %v1816_v18 = vsel %vm1782_vm1, %v4794_v13, 0.0 }
 0x508   : > { %1817 = vadd.xlane.f32.xlu1 %v1816_v18 }
 0x58b   : > { %v1809_v19 = vpop.xlane.xlu0 %1808 }
 0x58c   : > { %4795 = vrcp.f32 %v1809_v19 }
 0x58d   : > { %v1812_v24 = vpop.xlane.xlu1 %1811 }
 0x58e   : > { %4797 = vrcp.f32 %v1812_v24 }
 0x593   : > { %v1815_v25 = vpop.xlane.xlu0 %1814 }
 0x594   : > { %4799 = vrcp.f32 %v1815_v25 }
 0x595   : > { %v1818_v26 = vpop.xlane.xlu1 %1817 }
 0x596   : > { %v4796_v28 = vpop.eup %4795  ;;  %4801 = vrcp.f32 %v1818_v26 }
 0x597   : > { %v1823_v34 = vmul.f32 %v4796_v28, %v4788_v59 }
 0x598   : > { %v4798_v29 = vpop.eup %4797 }
 0x599   : > { %v1824_v38 = vmul.f32 %v4798_v29, %v4790_v6  ;;  %v4539_v29 = vld [vmem:[%s5633_s25] ss:$8 sps:$4 sm:$0xff]  }
 0x59b   : > { %v1827_v39 = vpack.c.bf16 %v1824_v38, %v1823_v34  ;;  %v4541_v34 = vld [vmem:[%s5633_s25 + $0x4] ss:$8 sps:$4 sm:$0xff]   ;;  %v4544_v38 = vld [vmem:[%s5633_s25 + $0x14] ss:$8 sps:$4 sm:$0xff]  }
 0x59c   : > { %2351 = vmatprep.subr.bf16.mxu0 %v4541_v34 }
 0x59d   : > { %4203 = vmatmul.mubr.msk.bf16.vlgmr.msra.gmra.mrb[8].mxu1 %vm1782_vm1, %v1827_v39  ;;  %2352 = vmatpush1.bf16.msra.mxu0 %v4539_v29  ;;  %v4542_v39 = vld [vmem:[%s5633_s25 + $0x10] ss:$8 sps:$4 sm:$0xff]  }
 0x59e   : > { %v4800_v40 = vpop.eup %4799  ;;  %4207 = vmatpush3.bf16.msra.mxu1 %v1695_v21  ;;  %4208 = vmatprep.mubr.msk.bf16.mxu1 %vm5164_vm0, %v5163_v12 }
 0x59f   : > { %4212 = vmatprep.subr.bf16.mxu1 %v5163_v12  ;;  %v1825_v42 = vmul.f32 %v4800_v40, %v4792_v10  ;;  %2353 = vmatprep.subr.bf16.mxu0 %v4544_v38  ;;  %v4547_v40 = vld [vmem:[%s5633_s25 + $0x24] ss:$8 sps:$4 sm:$0xff]  }
 0x5a0   : > { %v4802_v41 = vpop.eup %4801 }
 0x5a1   : > { %v1826_v47 = vmul.f32 %v4802_v41, %v4794_v13  ;;  %2354 = vmatpush1.bf16.msra.mxu0 %v4542_v39  ;;  %v4545_v41 = vld [vmem:[%s5633_s25 + $0x20] ss:$8 sps:$4 sm:$0xff]   ;;  %v2179_v39 = vld [vmem:[%s6536_s19] sm:$0x3] }
 0x5a2   : > { %2355 = vmatprep.subr.bf16.mxu0 %v4547_v40 }
 0x5a3   : > { %v1828_v48 = vpack.c.bf16 %v1826_v47, %v1825_v42  ;;  %v4550_v42 = vld [vmem:[%s5633_s25 + $0x34] ss:$8 sps:$4 sm:$0xff]   ;;  %v4548_v47 = vld [vmem:[%s5633_s25 + $0x30] ss:$8 sps:$4 sm:$0xff]  }
 0x5a5   : > { %4209 = vmatmul.mubr.msk.bf16.vlgmr.msra.gmra.mrb[12].mxu1 %vm1782_vm1, %v1828_v48  ;;  %2356 = vmatpush1.bf16.msra.mxu0 %v4545_v41  ;;  %v4553_v48 = vld [vmem:[%s5633_s25 + $0x44] ss:$8 sps:$4 sm:$0xff]  }
 0x5a6   : > { %4214 = vmatprep.mubr.msk.bf16.mxu1 %vm5164_vm0, %v5163_v12  ;;  %2357 = vmatprep.subr.bf16.mxu0 %v4550_v42 }
 0x5a7   : > { %4213 = vmatpush3.bf16.xpose.msra.mxu1 %v1919_v53 }
 0x5a8   : > { %4218 = vmatprep.subr.bf16.mxu1 %v5163_v12 }
 0x5a9   : > { %2358 = vmatpush1.bf16.msra.mxu0 %v4548_v47 }
 0x5aa   : > { %2359 = vmatprep.subr.bf16.mxu0 %v4553_v48  ;;  %v4827_v48 = vld [vmem:[%s5682_s10] sm:$0xff] }
 0x5ae   : > { %4215 = vmatmul.mubr.bf16.vlgmr.msra.gmra.mrb[16].mxu1 %v1917_v22 }
 0x5af   : > { %4219 = vmatpush3.bf16.xpose.msra.mxu1 %v1920_v56  ;;  %4220 = vmatprep.mubr.msk.bf16.mxu1 %vm5164_vm0, %v5163_v12 }
 0x5b0   : > { %4224 = vmatprep.subr.bf16.mxu1 %v5163_v12 }
 0x5b6   : > { %4221 = vmatmul.mubr.bf16.vlgmr.msra.gmra.mrb[20].mxu1 %v1918_v35 }
 0x5b7   : > { %4225 = vmatpush3.bf16.msra.mxu1 %v1921_v14  ;;  %4226 = vmatprep.mubr.msk.bf16.mxu1 %vm5164_vm0, %v5163_v12 }
 0x5b8   : > { %4230 = vmatprep.subr.bf16.mxu1 %v5163_v12 }
 0x670   : > { %v6006_v20 = vpop.f32.mrb[8].mxu1 }
 0x671   : > { %v4204_v11 = vpop.f32.mrb[9].mxu1 }
 0x672   : > { %v6008_v22 = vpop.f32.mrb[10].mxu1  ;;  %v4551_v11 = vld [vmem:[%s5633_s25 + $0x40] ss:$8 sps:$4 sm:$0xff]  }
 0x673   : > { %v2143_v50 = vpack.c.bf16 %v6008_v22, %v6006_v20  ;;  %v4205_v51 = vpop.f32.mrb[11].mxu1  ;;  %2360 = vmatpush1.bf16.msra.mxu0 %v4551_v11  ;;  %v2184_v20 = vrot.slane %v2179_v39, %v5796_v32  ;;  %v2188_v22 = vrot.slane %v2179_v39, %v5793_v31  ;;  %v4619_v39 = vld [vmem:[%s5639_s28 + $0xa4] ss:$16 sps:$4 sm:$0xff]  }
 0x674   : > { %v4556_v51 = vld [vmem:[%s5633_s25 + $0x54] ss:$8 sps:$4 sm:$0xff]  }
 0x675   : > { %2361 = vmatprep.subr.bf16.mxu0 %v4556_v51 }
 0x678   : > { %v6012_v30 = vpop.f32.mrb[12].mxu1 }
 0x679   : > { %v4210_v33 = vpop.f32.mrb[13].mxu1 }
 0x67a   : > { %v6014_v35 = vpop.f32.mrb[14].mxu1  ;;  %v4554_v33 = vld [vmem:[%s5633_s25 + $0x50] ss:$8 sps:$4 sm:$0xff]  }
 0x67b   : > { %v2145_v53 = vpack.c.bf16 %v6014_v35, %v6012_v30  ;;  %v4211_v62 = vpop.f32.mrb[15].mxu1  ;;  %2362 = vmatpush1.bf16.msra.mxu0 %v4554_v33 }
 0x67c   : > { %v4559_v62 = vld [vmem:[%s5633_s25 + $0x64] ss:$8 sps:$4 sm:$0xff]  }
 0x67d   : > { %2363 = vmatprep.subr.bf16.mxu0 %v4559_v62  ;;  %v4829_v62 = vld [vmem:[%s5682_s10 + $0x10] sm:$0xff] }
 0x681   : > { %v1957_v63 = vpop.f32.mrb[16].mxu1 }
 0x682   : > { %v2005_v56 = vmul.f32 0.088388346, %v1957_v63  ;;  %v4216_v8 = vpop.f32.mrb[17].mxu1  ;;  %v4557_v63 = vld [vmem:[%s5633_s25 + $0x60] ss:$8 sps:$4 sm:$0xff]  }
 0x683   : > { %v1960_v9 = vpop.f32.mrb[18].mxu1  ;;  %2364 = vmatpush1.bf16.msra.mxu0 %v4557_v63  ;;  %v4560_v8 = vld [vmem:[%s5633_s25 + $0x70] ss:$8 sps:$4 sm:$0xff]  }
 0x684   : > { %v2006_v14 = vmul.f32 0.088388346, %v1960_v9  ;;  %v4217_v16 = vpop.f32.mrb[19].mxu1  ;;  %v2009_v1 = vsel %vm1782_vm1, %v2005_v56, -inf  ;;  %v4565_v9 = vld [vmem:[%s5633_s25 + $0x84] ss:$8 sps:$4 sm:$0xff]  }
 0x685   : > { %2010 = vmax.xlane.f32.xlu0 %v2009_v1  ;;  %v4568_v16 = vld [vmem:[%s5633_s25 + $0x94] ss:$8 sps:$4 sm:$0xff]   ;;  %v4566_v1 = vld [vmem:[%s5633_s25 + $0x90] ss:$8 sps:$4 sm:$0xff]  }
 0x686   : > { %v2012_v21 = vsel %vm1782_vm1, %v2006_v14, -inf }
 0x687   : > { %2013 = vmax.xlane.f32.xlu1 %v2012_v21  ;;  %v4571_v21 = vld [vmem:[%s5633_s25 + $0xa4] ss:$8 sps:$4 sm:$0xff]  }
 0x689   : > { %v1998_v49 = vpop.f32.mrb[20].mxu1 }
 0x68a   : > { %v2007_v52 = vmul.f32 0.088388346, %v1998_v49  ;;  %v4222_v44 = vpop.f32.mrb[21].mxu1  ;;  %v4569_v49 = vld [vmem:[%s5633_s25 + $0xa0] ss:$8 sps:$4 sm:$0xff]  }
 0x68b   : > { %v2001_v54 = vpop.f32.mrb[22].mxu1  ;;  %v4572_v44 = vld [vmem:[%s5633_s25 + $0xb0] ss:$8 sps:$4 sm:$0xff]  }
 0x68c   : > { %v2008_v43 = vmul.f32 0.088388346, %v2001_v54  ;;  %v4223_v57 = vpop.f32.mrb[23].mxu1  ;;  %v2015_v60 = vsel %vm1782_vm1, %v2007_v52, -inf  ;;  %v4577_v54 = vld [vmem:[%s5633_s25 + $0xc4] ss:$8 sps:$4 sm:$0xff]  }
 0x68d   : > { %2016 = vmax.xlane.f32.xlu0 %v2015_v60  ;;  %v4580_v57 = vld [vmem:[%s5633_s25 + $0xd4] ss:$8 sps:$4 sm:$0xff]   ;;  %v4578_v60 = vld [vmem:[%s5633_s25 + $0xd0] ss:$8 sps:$4 sm:$0xff]  }
 0x68e   : > { %v2018_v61 = vsel %vm1782_vm1, %v2008_v43, -inf }
 0x68f   : > { %2019 = vmax.xlane.f32.xlu1 %v2018_v61  ;;  %v4583_v61 = vld [vmem:[%s5633_s25 + $0xe4] ss:$8 sps:$4 sm:$0xff]  }
 0x712   : > { %v2011_v0 = vpop.xlane.xlu0 %2010 }
 0x713   : > { %v2021_v55 = vsub.f32 %v2005_v56, %v2011_v0  ;;  %v4562_v56 = vld [vmem:[%s5633_s25 + $0x74] ss:$8 sps:$4 sm:$0xff]   ;;  %v4581_v0 = vld [vmem:[%s5633_s25 + $0xe0] ss:$8 sps:$4 sm:$0xff]  }
 0x714   : > { %v2014_v46 = vpop.xlane.xlu1 %2013  ;;  %2365 = vmatprep.subr.bf16.mxu0 %v4562_v56  ;;  %v4830_v56 = vld [vmem:[%s5682_s10 + $0x18] sm:$0xff] }
 0x715   : > { %v2025_v2 = vmul.f32 1.442695, %v2021_v55  ;;  %v2022_v3 = vsub.f32 %v2006_v14, %v2014_v46  ;;  %2366 = vmatpush1.bf16.msra.mxu0 %v4560_v8  ;;  %v4563_v14 = vld [vmem:[%s5633_s25 + $0x80] ss:$8 sps:$4 sm:$0xff]  }
 0x716   : > { %2367 = vmatprep.subr.bf16.mxu0 %v4565_v9 }
 0x717   : > { %4803 = vpow2.f32 %v2025_v2  ;;  %v2027_v4 = vmul.f32 1.442695, %v2022_v3 }
 0x719   : > { %4805 = vpow2.f32 %v2027_v4  ;;  %2368 = vmatpush1.bf16.msra.mxu0 %v4563_v14 }
 0x71a   : > { %v2017_v5 = vpop.xlane.xlu0 %2016  ;;  %2369 = vmatprep.subr.bf16.mxu0 %v4568_v16 }
 0x71b   : > { %v2023_v59 = vsub.f32 %v2007_v52, %v2017_v5  ;;  %v4574_v52 = vld [vmem:[%s5633_s25 + $0xb4] ss:$8 sps:$4 sm:$0xff]  }
 0x71c   : > { %v2020_v58 = vpop.xlane.xlu1 %2019 }
 0x71d   : > { %v2029_v6 = vmul.f32 1.442695, %v2023_v59  ;;  %v2024_v7 = vsub.f32 %v2008_v43, %v2020_v58  ;;  %2370 = vmatpush1.bf16.msra.mxu0 %v4566_v1  ;;  %v4575_v43 = vld [vmem:[%s5633_s25 + $0xc0] ss:$8 sps:$4 sm:$0xff]  }
 0x71e   : > { %2371 = vmatprep.subr.bf16.mxu0 %v4571_v21 }
 0x71f   : > { %4807 = vpow2.f32 %v2029_v6  ;;  %v2031_v10 = vmul.f32 1.442695, %v2024_v7 }
 0x721   : > { %v6022_v15 = vpop.eup %4803  ;;  %4809 = vpow2.f32 %v2031_v10  ;;  %2372 = vmatpush1.bf16.msra.mxu0 %v4569_v49 }
 0x722   : > { %v2033_v13 = vsel %vm1782_vm1, %v6022_v15, 0.0  ;;  %2373 = vmatprep.subr.bf16.mxu0 %v4574_v52 }
 0x723   : > { %v6026_v18 = vpop.eup %4805  ;;  %2034 = vadd.xlane.f32.xlu0 %v2033_v13 }
 0x724   : > { %v2036_v19 = vsel %vm1782_vm1, %v6026_v18, 0.0 }
 0x725   : > { %2037 = vadd.xlane.f32.xlu1 %v2036_v19  ;;  %2374 = vmatpush1.bf16.msra.mxu0 %v4572_v44  ;;  %v4831_v44 = vld [vmem:[%s5682_s10 + $0x20] sm:$0xff] }
 0x726   : > { %2375 = vmatprep.subr.bf16.mxu0 %v4577_v54 }
 0x729   : > { %v6030_v24 = vpop.eup %4807  ;;  %2376 = vmatpush1.bf16.msra.mxu0 %v4575_v43 }
 0x72a   : > { %v2039_v25 = vsel %vm1782_vm1, %v6030_v24, 0.0  ;;  %2377 = vmatprep.subr.bf16.mxu0 %v4580_v57 }
 0x72b   : > { %v6034_v26 = vpop.eup %4809  ;;  %2040 = vadd.xlane.f32.xlu0 %v2039_v25 }
 0x72c   : > { %v2042_v28 = vsel %vm1782_vm1, %v6034_v26, 0.0 }
 0x72d   : > { %2043 = vadd.xlane.f32.xlu1 %v2042_v28  ;;  %2378 = vmatpush1.bf16.msra.mxu0 %v4578_v60  ;;  %v4832_v60 = vld [vmem:[%s5682_s10 + $0x28] sm:$0xff] }
 0x72e   : > { %2379 = vmatprep.subr.bf16.mxu0 %v4583_v61 }
 0x731   : > { %2380 = vmatpush1.bf16.msra.mxu0 %v4581_v0 }
 0x7b0   : > { %v2035_v55 = vpop.xlane.xlu0 %2034 }
 0x7b1   : > { %4811 = vrcp.f32 %v2035_v55  ;;  %v4833_v55 = vld [vmem:[%s5682_s10 + $0x30] sm:$0xff] }
 0x7b2   : > { %v2038_v46 = vpop.xlane.xlu1 %2037 }
 0x7b3   : > { %4813 = vrcp.f32 %v2038_v46 }
 0x7b8   : > { %v2041_v2 = vpop.xlane.xlu0 %2040 }
 0x7b9   : > { %4815 = vrcp.f32 %v2041_v2  ;;  %v4834_v2 = vld [vmem:[%s5682_s10 + $0x38] sm:$0xff] }
 0x7ba   : > { %v2044_v3 = vpop.xlane.xlu1 %2043 }
 0x7bb   : > { %v4812_v4 = vpop.eup %4811  ;;  %4817 = vrcp.f32 %v2044_v3 }
 0x7bc   : > { %v2049_v59 = vmul.f32 %v4812_v4, %v6022_v15  ;;  %v4586_v15 = vld [vmem:[%s5633_s25 + $0xf4] ss:$8 sps:$4 sm:$0xff]  }
 0x7bd   : > { %v4814_v5 = vpop.eup %4813  ;;  %2381 = vmatprep.subr.bf16.mxu0 %v4586_v15  ;;  %v4601_v15 = vld [vmem:[%s5639_s28 + $0x44] ss:$16 sps:$4 sm:$0xff]  }
 0x7be   : > { %v2050_v58 = vmul.f32 %v4814_v5, %v6026_v18  ;;  %v4584_v18 = vld [vmem:[%s5633_s25 + $0xf0] ss:$8 sps:$4 sm:$0xff]  }
 0x7bf   : > { %2382 = vmatpush1.bf16.msra.mxu0 %v4584_v18  ;;  %v4604_v18 = vld [vmem:[%s5639_s28 + $0x4c] ss:$16 sps:$4 sm:$0xff]  }
 0x7c0   : > { %v2053_v6 = vpack.c.bf16 %v2050_v58, %v2049_v59  ;;  %v4587_v59 = vld [vmem:[%s5639_s28] ss:$16 sps:$4 sm:$0xff]   ;;  %v4589_v58 = vld [vmem:[%s5639_s28 + $0x4] ss:$16 sps:$4 sm:$0xff]  }
 0x7c2   : > { %4227 = vmatmul.mubr.msk.bf16.vlgmr.msra.gmra.mrb[24].mxu1 %vm1782_vm1, %v2053_v6  ;;  %v4590_v6 = vld [vmem:[%s5639_s28 + $0x8] ss:$16 sps:$4 sm:$0xff]  }
 0x7c3   : > { %v4816_v7 = vpop.eup %4815  ;;  %4231 = vmatpush3.bf16.msra.mxu1 %v1922_v23  ;;  %4232 = vmatprep.mubr.msk.bf16.mxu1 %vm5164_vm0, %v5163_v12 }
 0x7c4   : > { %v2051_v13 = vmul.f32 %v4816_v7, %v6030_v24  ;;  %v4592_v7 = vld [vmem:[%s5639_s28 + $0xc] ss:$16 sps:$4 sm:$0xff]   ;;  %2926 = vmatprep.subr.bf16.mxu1 %v4589_v58 }
 0x7c5   : > { %v4818_v10 = vpop.eup %4817  ;;  %2979 = vmatprep.subr.bf16.mxu0 %v4592_v7 }
 0x7c6   : > { %v2052_v19 = vmul.f32 %v4818_v10, %v6034_v26  ;;  %v4595_v10 = vld [vmem:[%s5639_s28 + $0x24] ss:$16 sps:$4 sm:$0xff]  }
 0x7c8   : > { %v2054_v25 = vpack.c.bf16 %v2052_v19, %v2051_v13  ;;  %v4598_v13 = vld [vmem:[%s5639_s28 + $0x2c] ss:$16 sps:$4 sm:$0xff]   ;;  %v4593_v19 = vld [vmem:[%s5639_s28 + $0x20] ss:$16 sps:$4 sm:$0xff]  }
 0x7ca   : > { %4233 = vmatmul.mubr.msk.bf16.vlgmr.msra.gmra.mrb[28].mxu1 %vm1782_vm1, %v2054_v25  ;;  %v4596_v25 = vld [vmem:[%s5639_s28 + $0x28] ss:$16 sps:$4 sm:$0xff]  }
 0x7cb   : > { %2927 = vmatpush1.bf16.msra.mxu1 %v4587_v59 }
 0x7cc   : > { %2928 = vmatprep.subr.bf16.mxu1 %v4595_v10 }
 0x7cf   : > { %2929 = vmatpush1.bf16.msra.mxu1 %v4593_v19 }
 0x7d0   : > { %2930 = vmatprep.subr.bf16.mxu1 %v4601_v15 }
 0x895   : > { %v2092_v28 = vpop.f32.mrb[24].mxu1 }
 0x896   : > { %v4228_v29 = vpop.f32.mrb[25].mxu1 }
 0x897   : > { %v2095_v17 = vpop.f32.mrb[26].mxu1  ;;  %v4602_v29 = vld [vmem:[%s5639_s28 + $0x48] ss:$16 sps:$4 sm:$0xff]  }
 0x898   : > { %v2144_v45 = vpack.c.bf16 %v2095_v17, %v2092_v28  ;;  %v4229_v23 = vpop.f32.mrb[27].mxu1  ;;  %v4599_v28 = vld [vmem:[%s5639_s28 + $0x40] ss:$16 sps:$4 sm:$0xff]   ;;  %v4607_v17 = vld [vmem:[%s5639_s28 + $0x64] ss:$16 sps:$4 sm:$0xff]  }
 0x899   : > { %2931 = vmatpush1.bf16.msra.mxu1 %v4599_v28  ;;  %v4605_v23 = vld [vmem:[%s5639_s28 + $0x60] ss:$16 sps:$4 sm:$0xff]  }
 0x89a   : > { %2383 = vmatprep.mubr.bf16.mxu0 %v2144_v45  ;;  %v4610_v45 = vld [vmem:[%s5639_s28 + $0x6c] ss:$16 sps:$4 sm:$0xff]   ;;  %2932 = vmatprep.subr.bf16.mxu1 %v4607_v17 }
 0x89b   : > { %2384 = vmatmul.mubr.bf16.vlgmr.msra.gmra.mrb[24].mxu0 %v2143_v50 }
 0x89c   : > { %2980 = vmatpush1.bf16.msra.mxu0 %v4590_v6 }
 0x89d   : > { %v2136_v12 = vpop.f32.mrb[28].mxu1  ;;  %2981 = vmatprep.subr.bf16.mxu0 %v4598_v13  ;;  %2933 = vmatpush1.bf16.msra.mxu1 %v4605_v23 }
 0x89e   : > { %v4234_v24 = vpop.f32.mrb[29].mxu1 }
 0x89f   : > { %v2139_v26 = vpop.f32.mrb[30].mxu1  ;;  %v4613_v24 = vld [vmem:[%s5639_s28 + $0x84] ss:$16 sps:$4 sm:$0xff]  }
 0x8a0   : > { %v2146_v34 = vpack.c.bf16 %v2139_v26, %v2136_v12  ;;  %v4235_v38 = vpop.f32.mrb[31].mxu1  ;;  %2982 = vmatpush1.bf16.msra.mxu0 %v4596_v25  ;;  %v4608_v12 = vld [vmem:[%s5639_s28 + $0x68] ss:$16 sps:$4 sm:$0xff]   ;;  %v4616_v26 = vld [vmem:[%s5639_s28 + $0x8c] ss:$16 sps:$4 sm:$0xff]   ;;  %2934 = vmatprep.subr.bf16.mxu1 %v4613_v24 }
 0x8a1   : > { %2983 = vmatprep.subr.bf16.mxu0 %v4604_v18  ;;  %v4614_v38 = vld [vmem:[%s5639_s28 + $0x88] ss:$16 sps:$4 sm:$0xff]  }
 0x8a2   : > { %2393 = vmatprep.mubr.bf16.mxu0 %v2146_v34  ;;  %v4611_v34 = vld [vmem:[%s5639_s28 + $0x80] ss:$16 sps:$4 sm:$0xff]  }
 0x8a3   : > { %2394 = vmatmul.mubr.bf16.gmra.mrb[28].mxu0 %v2145_v53  ;;  %v4828_v53 = vld [vmem:[%s5682_s10 + $0x8] sm:$0xff]  ;;  %2935 = vmatpush1.bf16.msra.mxu1 %v4611_v34 }
 0x8a4   : > { %2984 = vmatpush1.bf16.msra.mxu0 %v4602_v29  ;;  %2936 = vmatprep.subr.bf16.mxu1 %v4619_v39  ;;  %v4652_v34 = vld [vmem:[%s5639_s28 + $0x14c] ss:$16 sps:$4 sm:$0xff]   ;;  %v4650_v39 = vld [vmem:[%s5639_s28 + $0x148] ss:$16 sps:$4 sm:$0xff]  }
 0x8a5   : > { %2985 = vmatprep.subr.bf16.mxu0 %v4610_v45 }
 0x8a8   : > { %2986 = vmatpush1.bf16.msra.mxu0 %v4608_v12 }
 0x8a9   : > { %2987 = vmatprep.subr.bf16.mxu0 %v4616_v26  ;;  %v4649_v26 = vld [vmem:[%s5639_s28 + $0x144] ss:$16 sps:$4 sm:$0xff]  }
 0x8ac   : > { %2988 = vmatpush1.bf16.msra.mxu0 %v4614_v38  ;;  %v4647_v38 = vld [vmem:[%s5639_s28 + $0x140] ss:$16 sps:$4 sm:$0xff]  }
 0x96e   : > { %v2385_v50 = vpop.f32.mrb[24].mxu0 }
 0x96f   : > { %v2386_v40 = vadd.f32 %v2385_v50, %v2184_v20  ;;  %v2387_v41 = vpop.f32.mrb[25].mxu0  ;;  %v4620_v50 = vld [vmem:[%s5639_s28 + $0xa8] ss:$16 sps:$4 sm:$0xff]  }
 0x970   : > { %v2388_v42 = vadd.f32 %v2387_v41, %v2188_v22  ;;  %v2389_v47 = vpop.f32.mrb[26].mxu0  ;;  %v4628_v41 = vld [vmem:[%s5639_s28 + $0xcc] ss:$16 sps:$4 sm:$0xff]  }
 0x971   : > { %v6095_v11 = vadd.f32 %v4827_v48, %v2386_v40  ;;  %v2390_v30 = vadd.f32 %v2389_v47, %v2184_v20  ;;  %v2391_v35 = vpop.f32.mrb[27].mxu0  ;;  %v4625_v40 = vld [vmem:[%s5639_s28 + $0xc4] ss:$16 sps:$4 sm:$0xff]   ;;  %v4626_v47 = vld [vmem:[%s5639_s28 + $0xc8] ss:$16 sps:$4 sm:$0xff]  }
 0x972   : > { %v6098_v51 = vadd.f32 %v4828_v53, %v2388_v42  ;;  %v2392_v33 = vadd.f32 %v2391_v35, %v2188_v22  ;;  %v4623_v42 = vld [vmem:[%s5639_s28 + $0xc0] ss:$16 sps:$4 sm:$0xff]   ;;  %v4631_v48 = vld [vmem:[%s5639_s28 + $0xe4] ss:$16 sps:$4 sm:$0xff]   ;;  %v4632_v53 = vld [vmem:[%s5639_s28 + $0xe8] ss:$16 sps:$4 sm:$0xff]  }
 0x973   : > { %v6101_v63 = vadd.f32 %v4829_v62, %v2390_v30  ;;  %v4634_v30 = vld [vmem:[%s5639_s28 + $0xec] ss:$16 sps:$4 sm:$0xff]   ;;  %v4629_v35 = vld [vmem:[%s5639_s28 + $0xe0] ss:$16 sps:$4 sm:$0xff]  }
 0x974   : > { %v6104_v8 = vadd.f32 %v4830_v56, %v2392_v33  ;;  %v2414_v9 = vadd.f32 %v6098_v51, %v6095_v11  ;;  %v4637_v33 = vld [vmem:[%s5639_s28 + $0x104] ss:$16 sps:$4 sm:$0xff]   ;;  %v4640_v62 = vld [vmem:[%s5639_s28 + $0x10c] ss:$16 sps:$4 sm:$0xff]   ;;  %v4635_v56 = vld [vmem:[%s5639_s28 + $0x100] ss:$16 sps:$4 sm:$0xff]  }
 0x976   : > { %2415 = vadd.xlane.f32.xlu0 %v2414_v9  ;;  %v2395_v14 = vpop.f32.mrb[28].mxu0  ;;  %v2417_v16 = vadd.f32 %v6104_v8, %v6101_v63  ;;  %v4638_v9 = vld [vmem:[%s5639_s28 + $0x108] ss:$16 sps:$4 sm:$0xff]  }
 0x977   : > { %v2396_v1 = vadd.f32 %v2395_v14, %v2184_v20  ;;  %v2397_v21 = vpop.f32.mrb[29].mxu0  ;;  %v4643_v14 = vld [vmem:[%s5639_s28 + $0x124] ss:$16 sps:$4 sm:$0xff]  }
 0x978   : > { %v2398_v49 = vadd.f32 %v2397_v21, %v2188_v22  ;;  %2418 = vadd.xlane.f32.xlu1 %v2417_v16  ;;  %v2399_v52 = vpop.f32.mrb[30].mxu0  ;;  %v4646_v16 = vld [vmem:[%s5639_s28 + $0x12c] ss:$16 sps:$4 sm:$0xff]   ;;  %v4644_v21 = vld [vmem:[%s5639_s28 + $0x128] ss:$16 sps:$4 sm:$0xff]  }
 0x979   : > { %v6111_v54 = vadd.f32 %v4831_v44, %v2396_v1  ;;  %v2400_v43 = vadd.f32 %v2399_v52, %v2184_v20  ;;  %v2401_v57 = vpop.f32.mrb[31].mxu0  ;;  %v4622_v20 = vld [vmem:[%s5639_s28 + $0xac] ss:$16 sps:$4 sm:$0xff]   ;;  %v4641_v1 = vld [vmem:[%s5639_s28 + $0x120] ss:$16 sps:$4 sm:$0xff]  }
 0x97a   : > { %v6114_v61 = vadd.f32 %v4832_v60, %v2398_v49  ;;  %v2402_v0 = vadd.f32 %v2401_v57, %v2188_v22  ;;  %v4617_v22 = vld [vmem:[%s5639_s28 + $0xa0] ss:$16 sps:$4 sm:$0xff]   ;;  %2989 = vmatprep.subr.bf16.mxu0 %v4622_v20  ;;  %v4655_v20 = vld [vmem:[%s5639_s28 + $0x164] ss:$16 sps:$4 sm:$0xff]  }
 0x97b   : > { %v6117_v46 = vadd.f32 %v4833_v55, %v2400_v43  ;;  %2937 = vmatpush1.bf16.msra.mxu1 %v4617_v22  ;;  %2990 = vmatpush1.bf16.msra.mxu0 %v4620_v50  ;;  %v4658_v22 = vld [vmem:[%s5639_s28 + $0x16c] ss:$16 sps:$4 sm:$0xff]   ;;  %v4653_v50 = vld [vmem:[%s5639_s28 + $0x160] ss:$16 sps:$4 sm:$0xff]  }
 0x97c   : > { %v6120_v3 = vadd.f32 %v4834_v2, %v2402_v0  ;;  %v2420_v4 = vadd.f32 %v6114_v61, %v6111_v54  ;;  %2938 = vmatprep.subr.bf16.mxu1 %v4625_v40  ;;  %2991 = vmatprep.subr.bf16.mxu0 %v4628_v41  ;;  %v4656_v40 = vld [vmem:[%s5639_s28 + $0x168] ss:$16 sps:$4 sm:$0xff]   ;;  %v4661_v41 = vld [vmem:[%s5639_s28 + $0x184] ss:$16 sps:$4 sm:$0xff]  }
 0x97e   : > { %2421 = vadd.xlane.f32.xlu0 %v2420_v4  ;;  %v2423_v5 = vadd.f32 %v6120_v3, %v6117_v46 }
 0x97f   : > { %2939 = vmatpush1.bf16.msra.mxu1 %v4623_v42  ;;  %2992 = vmatpush1.bf16.msra.mxu0 %v4626_v47  ;;  %v4664_v42 = vld [vmem:[%s5639_s28 + $0x18c] ss:$16 sps:$4 sm:$0xff]   ;;  %v4659_v47 = vld [vmem:[%s5639_s28 + $0x180] ss:$16 sps:$4 sm:$0xff]  }
 0x980   : > { %2424 = vadd.xlane.f32.xlu1 %v2423_v5  ;;  %2940 = vmatprep.subr.bf16.mxu1 %v4631_v48  ;;  %v4662_v48 = vld [vmem:[%s5639_s28 + $0x188] ss:$16 sps:$4 sm:$0xff]  }
 0x981   : > { %2993 = vmatprep.subr.bf16.mxu0 %v4634_v30  ;;  %v4667_v30 = vld [vmem:[%s5639_s28 + $0x1a4] ss:$16 sps:$4 sm:$0xff]  }
 0x983   : > { %2941 = vmatpush1.bf16.msra.mxu1 %v4629_v35  ;;  %2994 = vmatpush1.bf16.msra.mxu0 %v4632_v53  ;;  %v4670_v35 = vld [vmem:[%s5639_s28 + $0x1ac] ss:$16 sps:$4 sm:$0xff]   ;;  %v4665_v53 = vld [vmem:[%s5639_s28 + $0x1a0] ss:$16 sps:$4 sm:$0xff]  }
 0x984   : > { %2942 = vmatprep.subr.bf16.mxu1 %v4637_v33  ;;  %2995 = vmatprep.subr.bf16.mxu0 %v4640_v62  ;;  %v4668_v33 = vld [vmem:[%s5639_s28 + $0x1a8] ss:$16 sps:$4 sm:$0xff]   ;;  %v4671_v62 = vld [vmem:[%s5639_s28 + $0x1c0] ss:$16 sps:$4 sm:$0xff]  }
 0x987   : > { %2943 = vmatpush1.bf16.msra.mxu1 %v4635_v56  ;;  %2996 = vmatpush1.bf16.msra.mxu0 %v4638_v9  ;;  %v4673_v56 = vld [vmem:[%s5639_s28 + $0x1c4] ss:$16 sps:$4 sm:$0xff]   ;;  %v4674_v9 = vld [vmem:[%s5639_s28 + $0x1c8] ss:$16 sps:$4 sm:$0xff]  }
 0x988   : > { %2944 = vmatprep.subr.bf16.mxu1 %v4643_v14  ;;  %2997 = vmatprep.subr.bf16.mxu0 %v4646_v16  ;;  %v4676_v14 = vld [vmem:[%s5639_s28 + $0x1cc] ss:$16 sps:$4 sm:$0xff]   ;;  %v4679_v16 = vld [vmem:[%s5639_s28 + $0x1e4] ss:$16 sps:$4 sm:$0xff]  }
 0x98b   : > { %2945 = vmatpush1.bf16.msra.mxu1 %v4641_v1  ;;  %2998 = vmatpush1.bf16.msra.mxu0 %v4644_v21  ;;  %v4682_v1 = vld [vmem:[%s5639_s28 + $0x1ec] ss:$16 sps:$4 sm:$0xff]   ;;  %v4677_v21 = vld [vmem:[%s5639_s28 + $0x1e0] ss:$16 sps:$4 sm:$0xff]  }
 0x98c   : > { %2946 = vmatprep.subr.bf16.mxu1 %v4649_v26  ;;  %2999 = vmatprep.subr.bf16.mxu0 %v4652_v34 }
 0x98f   : > { %2947 = vmatpush1.bf16.msra.mxu1 %v4647_v38  ;;  %3000 = vmatpush1.bf16.msra.mxu0 %v4650_v39 }
 0x990   : > { %2948 = vmatprep.subr.bf16.mxu1 %v4655_v20  ;;  %3001 = vmatprep.subr.bf16.mxu0 %v4658_v22 }
 0x993   : > { %2949 = vmatpush1.bf16.msra.mxu1 %v4653_v50  ;;  %3002 = vmatpush1.bf16.msra.mxu0 %v4656_v40 }
 0x994   : > { %2950 = vmatprep.subr.bf16.mxu1 %v4661_v41  ;;  %3003 = vmatprep.subr.bf16.mxu0 %v4664_v42 }
 0x997   : > { %2951 = vmatpush1.bf16.msra.mxu1 %v4659_v47  ;;  %3004 = vmatpush1.bf16.msra.mxu0 %v4662_v48 }
 0x998   : > { %2952 = vmatprep.subr.bf16.mxu1 %v4667_v30  ;;  %3005 = vmatprep.subr.bf16.mxu0 %v4670_v35 }
 0x99b   : > { %2953 = vmatpush1.bf16.msra.mxu1 %v4665_v53  ;;  %3006 = vmatpush1.bf16.msra.mxu0 %v4668_v33 }
 0x99c   : > { %2954 = vmatprep.subr.bf16.mxu1 %v4673_v56  ;;  %3007 = vmatprep.subr.bf16.mxu0 %v4676_v14  ;;  %v4688_v56 = vld [vmem:[%s5641_s4 + $0x14] ss:$8 sps:$4 sm:$0xff]  }
 0x99f   : > { %2955 = vmatpush1.bf16.msra.mxu1 %v4671_v62  ;;  %3008 = vmatpush1.bf16.msra.mxu0 %v4674_v9 }
 0x9a0   : > { %2956 = vmatprep.subr.bf16.mxu1 %v4679_v16  ;;  %3009 = vmatprep.subr.bf16.mxu0 %v4682_v1 }
 0x9a3   : > { %2957 = vmatpush1.bf16.msra.mxu1 %v4677_v21 }
 0xa03   : > { %v2416_v49 = vpop.xlane.xlu0 %2415 }
 0xa04   : > { %v2426_v52 = vmul.f32 0.00390625, %v2416_v49  ;;  %v4680_v49 = vld [vmem:[%s5639_s28 + $0x1e8] ss:$16 sps:$4 sm:$0xff]  }
 0xa05   : > { %v2419_v44 = vpop.xlane.xlu1 %2418  ;;  %3010 = vmatpush1.bf16.msra.mxu0 %v4680_v49  ;;  %v4691_v49 = vld [vmem:[%s5641_s4 + $0x24] ss:$8 sps:$4 sm:$0xff]  }
 0xa06   : > { %v6167_v43 = vsub.f32 %v6095_v11, %v2426_v52  ;;  %v6170_v57 = vsub.f32 %v6098_v51, %v2426_v52  ;;  %v2427_v60 = vmul.f32 0.00390625, %v2419_v44  ;;  %v4685_v52 = vld [vmem:[%s5641_s4 + $0x4] ss:$8 sps:$4 sm:$0xff]  }
 0xa07   : > { %3452 = vmatprep.subr.bf16.mxu1 %v4685_v52 }
 0xa08   : > { %v6173_v0 = vsub.f32 %v6101_v63, %v2427_v60  ;;  %v6176_v55 = vsub.f32 %v6104_v8, %v2427_v60  ;;  %v2438_v2 = vmul.f32 %v6167_v43, %v6167_v43  ;;  %v2439_v4 = vmul.f32 %v6170_v57, %v6170_v57 }
 0xa0a   : > { %v2446_v5 = vadd.f32 %v2439_v4, %v2438_v2  ;;  %v2440_v59 = vmul.f32 %v6173_v0, %v6173_v0  ;;  %v2441_v58 = vmul.f32 %v6176_v55, %v6176_v55 }
 0xa0b   : > { %v2422_v6 = vpop.xlane.xlu0 %2421 }
 0xa0c   : > { %v2428_v7 = vmul.f32 0.00390625, %v2422_v6  ;;  %2447 = vadd.xlane.f32.xlu0 %v2446_v5  ;;  %v2449_v10 = vadd.f32 %v2441_v58, %v2440_v59 }
 0xa0d   : > { %v2425_v13 = vpop.xlane.xlu1 %2424 }
 0xa0e   : > { %v6187_v19 = vsub.f32 %v6111_v54, %v2428_v7  ;;  %v6190_v25 = vsub.f32 %v6114_v61, %v2428_v7  ;;  %v2429_v15 = vmul.f32 0.00390625, %v2425_v13  ;;  %2450 = vadd.xlane.f32.xlu1 %v2449_v10 }
 0xa10   : > { %v6193_v18 = vsub.f32 %v6117_v46, %v2429_v15  ;;  %v6196_v28 = vsub.f32 %v6120_v3, %v2429_v15  ;;  %v2442_v29 = vmul.f32 %v6187_v19, %v6187_v19  ;;  %v2443_v17 = vmul.f32 %v6190_v25, %v6190_v25  ;;  %v2412_v15 = vld [vmem:[%s779_s23] sm:$0x3] }
 0xa12   : > { %v2452_v45 = vadd.f32 %v2443_v17, %v2442_v29  ;;  %v2444_v23 = vmul.f32 %v6193_v18, %v6193_v18  ;;  %v2445_v12 = vmul.f32 %v6196_v28, %v6196_v28  ;;  %v2413_v17 = vld [vmem:[%s783_s11] sm:$0x3]  ;;  %s6544_s11 = smov %s6543_s27 }
 0xa13   : > { %v2501_v38 = vrot.slane %v2413_v17, %v5796_v32  ;;  %v2505_v39 = vrot.slane %v2413_v17, %v5793_v31  ;;  %v4704_v17 = vld [vmem:[%s5641_s4 + $0x70] ss:$8 sps:$4 sm:$0xff]  }
 0xa14   : > { %2453 = vadd.xlane.f32.xlu0 %v2452_v45  ;;  %v2455_v24 = vadd.f32 %v2445_v12, %v2444_v23  ;;  %v2482_v45 = vrot.slane %v2412_v15, %v5796_v32  ;;  %v2486_v23 = vrot.slane %v2412_v15, %v5793_v31  ;;  %v4701_v15 = vld [vmem:[%s5641_s4 + $0x60] ss:$8 sps:$4 sm:$0xff]  }
 0xa16   : > { %2456 = vadd.xlane.f32.xlu1 %v2455_v24 }
 0xa99   : > { %v2448_v44 = vpop.xlane.xlu0 %2447 }
 0xa9a   : > { %v2458_v60 = vmul.f32 0.00390625, %v2448_v44 }
 0xa9b   : > { %v2451_v2 = vpop.xlane.xlu1 %2450 }
 0xa9c   : > { %v2462_v4 = vadd.f32 1e-05, %v2458_v60  ;;  %v2459_v5 = vmul.f32 0.00390625, %v2451_v2 }
 0xa9e   : > { %4819 = vrsqrt.f32 %v2462_v4  ;;  %v2463_v59 = vadd.f32 1e-05, %v2459_v5  ;;  %v4689_v4 = vld [vmem:[%s5641_s4 + $0x20] ss:$8 sps:$4 sm:$0xff]   ;;  %v4694_v5 = vld [vmem:[%s5641_s4 + $0x34] ss:$8 sps:$4 sm:$0xff]  }
 0xaa0   : > { %4821 = vrsqrt.f32 %v2463_v59  ;;  %v4692_v59 = vld [vmem:[%s5641_s4 + $0x30] ss:$8 sps:$4 sm:$0xff]  }
 0xaa1   : > { %v2454_v58 = vpop.xlane.xlu0 %2453 }
 0xaa2   : > { %v2460_v6 = vmul.f32 0.00390625, %v2454_v58  ;;  %v4697_v58 = vld [vmem:[%s5641_s4 + $0x44] ss:$8 sps:$4 sm:$0xff]  }
 0xaa3   : > { %v2457_v7 = vpop.xlane.xlu1 %2456 }
 0xaa4   : > { %v2464_v10 = vadd.f32 1e-05, %v2460_v6  ;;  %v2461_v13 = vmul.f32 0.00390625, %v2457_v7  ;;  %v4695_v6 = vld [vmem:[%s5641_s4 + $0x40] ss:$8 sps:$4 sm:$0xff]  }
 0xaa5   : > { %v4700_v7 = vld [vmem:[%s5641_s4 + $0x54] ss:$8 sps:$4 sm:$0xff]  }
 0xaa6   : > { %4823 = vrsqrt.f32 %v2464_v10  ;;  %v2465_v29 = vadd.f32 1e-05, %v2461_v13  ;;  %v4698_v10 = vld [vmem:[%s5641_s4 + $0x50] ss:$8 sps:$4 sm:$0xff]   ;;  %v4703_v13 = vld [vmem:[%s5641_s4 + $0x64] ss:$8 sps:$4 sm:$0xff]  }
 0xaa8   : > { %v4820_v12 = vpop.eup %4819  ;;  %4825 = vrsqrt.f32 %v2465_v29  ;;  %v4706_v29 = vld [vmem:[%s5641_s4 + $0x74] ss:$8 sps:$4 sm:$0xff]  }
 0xaa9   : > { %v2470_v24 = vmul.f32 %v4820_v12, %v6167_v43  ;;  %v2471_v26 = vmul.f32 %v4820_v12, %v6170_v57  ;;  %v4712_v12 = vld [vmem:[%s5641_s4 + $0x94] ss:$8 sps:$4 sm:$0xff]  }
 0xaaa   : > { %v4822_v34 = vpop.eup %4821 }
 0xaab   : > { %v2472_v20 = vmul.f32 %v4822_v34, %v6173_v0  ;;  %v2473_v22 = vmul.f32 %v4822_v34, %v6176_v55  ;;  %v2490_v50 = vmul.f32 %v2486_v23, %v2471_v26  ;;  %v2489_v40 = vmul.f32 %v2482_v45, %v2470_v24  ;;  %v4683_v0 = vld [vmem:[%s5641_s4] ss:$8 sps:$4 sm:$0xff]   ;;  %v4710_v24 = vld [vmem:[%s5641_s4 + $0x90] ss:$8 sps:$4 sm:$0xff]   ;;  %v4715_v26 = vld [vmem:[%s5641_s4 + $0xa4] ss:$8 sps:$4 sm:$0xff]  }
 0xaac   : > { %v4713_v34 = vld [vmem:[%s5641_s4 + $0xa0] ss:$8 sps:$4 sm:$0xff]  }
 0xaad   : > { %v2492_v41 = vmul.f32 %v2486_v23, %v2473_v22  ;;  %v2491_v42 = vmul.f32 %v2482_v45, %v2472_v20  ;;  %v2509_v47 = vadd.f32 %v2505_v39, %v2490_v50  ;;  %v2508_v43 = vadd.f32 %v2501_v38, %v2489_v40  ;;  %v4721_v20 = vld [vmem:[%s5641_s4 + $0xc4] ss:$8 sps:$4 sm:$0xff]   ;;  %v4719_v22 = vld [vmem:[%s5641_s4 + $0xc0] ss:$8 sps:$4 sm:$0xff]   ;;  %v4724_v50 = vld [vmem:[%s5641_s4 + $0xd4] ss:$8 sps:$4 sm:$0xff]  }
 0xaae   : > { %v4722_v40 = vld [vmem:[%s5641_s4 + $0xd0] ss:$8 sps:$4 sm:$0xff]  }
 0xaaf   : > { %v2511_v48 = vadd.f32 %v2505_v39, %v2492_v41  ;;  %v2510_v30 = vadd.f32 %v2501_v38, %v2491_v42  ;;  %v4727_v41 = vld [vmem:[%s5641_s4 + $0xe4] ss:$8 sps:$4 sm:$0xff]   ;;  %v4725_v42 = vld [vmem:[%s5641_s4 + $0xe0] ss:$8 sps:$4 sm:$0xff]  }
 0xab0   : > { %v4824_v57 = vpop.eup %4823 }
 0xab1   : > { %v2517_v35 = vpack.c.bf16 %v2511_v48, %v2509_v47  ;;  %v2516_v53 = vpack.c.bf16 %v2510_v30, %v2508_v43  ;;  %v2475_v33 = vmul.f32 %v4824_v57, %v6190_v25  ;;  %v2474_v62 = vmul.f32 %v4824_v57, %v6187_v19  ;;  %v4686_v19 = vld [vmem:[%s5641_s4 + $0x10] ss:$8 sps:$4 sm:$0xff]   ;;  %v4730_v47 = vld [vmem:[%s5641_s4 + $0xf4] ss:$8 sps:$4 sm:$0xff]   ;;  %v4733_v43 = vld [vmem:[%s5641_s4 + $0x104] ss:$8 sps:$4 sm:$0xff]  }
 0xab2   : > { %v4826_v55 = vpop.eup %4825  ;;  %v4728_v48 = vld [vmem:[%s5641_s4 + $0xf0] ss:$8 sps:$4 sm:$0xff]   ;;  %v2584_v30 = vld [vmem:[%s6539_s1] sm:$0xf] }
 0xab3   : > { %2958 = vmatprep.mubr.bf16.mxu1 %v2517_v35  ;;  %3011 = vmatprep.mubr.bf16.mxu0 %v2517_v35  ;;  %v2477_v9 = vmul.f32 %v4826_v55, %v6196_v28  ;;  %v2494_v14 = vmul.f32 %v2486_v23, %v2475_v33  ;;  %v2476_v16 = vmul.f32 %v4826_v55, %v6193_v18 }
 0xab4   : > { %2959 = vmatmul.mubr.bf16.vlgmr.msra.gmra.mrb[32].mxu1 %v2516_v53  ;;  %3012 = vmatmul.mubr.bf16.vlgmr.msra.gmra.mrb[32].mxu0 %v2516_v53  ;;  %v2493_v1 = vmul.f32 %v2482_v45, %v2474_v62  ;;  %v2589_v57 = vrot.slane %v2584_v30, %v5796_v32  ;;  %v2597_v35 = vrot.slane %v2584_v30, %v1031_v36 }
 0xab5   : > { %v2496_v25 = vmul.f32 %v2486_v23, %v2477_v9  ;;  %v2495_v21 = vmul.f32 %v2482_v45, %v2476_v16  ;;  %3453 = vmatpush1.bf16.msra.mxu1 %v4683_v0  ;;  %v2513_v52 = vadd.f32 %v2505_v39, %v2494_v14  ;;  %v4709_v45 = vld [vmem:[%s5641_s4 + $0x84] ss:$8 sps:$4 sm:$0xff]   ;;  %v4707_v23 = vld [vmem:[%s5641_s4 + $0x80] ss:$8 sps:$4 sm:$0xff]   ;;  %v2593_v53 = vrot.slane %v2584_v30, %v5793_v31 }
 0xab6   : > { %3454 = vmatprep.subr.bf16.mxu1 %v4688_v56  ;;  %v2512_v60 = vadd.f32 %v2501_v38, %v2493_v1  ;;  %v2601_v33 = vrot.slane %v2584_v30, %v1035_v37 }
 0xab7   : > { %v2515_v44 = vadd.f32 %v2505_v39, %v2496_v25  ;;  %v2514_v28 = vadd.f32 %v2501_v38, %v2495_v21  ;;  %v4718_v38 = vld [vmem:[%s5641_s4 + $0xb4] ss:$8 sps:$4 sm:$0xff]   ;;  %v4716_v39 = vld [vmem:[%s5641_s4 + $0xb0] ss:$8 sps:$4 sm:$0xff]  }
 0xab9   : > { %v2519_v2 = vpack.c.bf16 %v2515_v44, %v2513_v52  ;;  %v2518_v18 = vpack.c.bf16 %v2514_v28, %v2512_v60  ;;  %3455 = vmatpush1.bf16.msra.mxu1 %v4686_v19 }
 0xaba   : > { %3456 = vmatprep.subr.bf16.mxu1 %v4691_v49 }
 0xabb   : > { %2968 = vmatprep.mubr.bf16.mxu1 %v2519_v2  ;;  %3021 = vmatprep.mubr.bf16.mxu0 %v2519_v2 }
 0xabc   : > { %2969 = vmatmul.mubr.bf16.gmra.mrb[36].mxu1 %v2518_v18  ;;  %3022 = vmatmul.mubr.bf16.gmra.mrb[36].mxu0 %v2518_v18 }
 0xabd   : > { %3457 = vmatpush1.bf16.msra.mxu1 %v4689_v4 }
 0xabe   : > { %3458 = vmatprep.subr.bf16.mxu1 %v4694_v5 }
 0xac1   : > { %3459 = vmatpush1.bf16.msra.mxu1 %v4692_v59 }
 0xac2   : > { %3460 = vmatprep.subr.bf16.mxu1 %v4697_v58 }
 0xac5   : > { %3461 = vmatpush1.bf16.msra.mxu1 %v4695_v6 }
 0xac6   : > { %3462 = vmatprep.subr.bf16.mxu1 %v4700_v7 }
 0xac9   : > { %3463 = vmatpush1.bf16.msra.mxu1 %v4698_v10 }
 0xaca   : > { %3464 = vmatprep.subr.bf16.mxu1 %v4703_v13 }
 0xacd   : > { %3465 = vmatpush1.bf16.msra.mxu1 %v4701_v15 }
 0xace   : > { %3466 = vmatprep.subr.bf16.mxu1 %v4706_v29  ;;  %v4731_v29 = vld [vmem:[%s5641_s4 + $0x100] ss:$8 sps:$4 sm:$0xff]  }
 0xad1   : > { %3467 = vmatpush1.bf16.msra.mxu1 %v4704_v17 }
 0xad2   : > { %3468 = vmatprep.subr.bf16.mxu1 %v4709_v45 }
 0xad5   : > { %3469 = vmatpush1.bf16.msra.mxu1 %v4707_v23 }
 0xad6   : > { %3470 = vmatprep.subr.bf16.mxu1 %v4712_v12 }
 0xad9   : > { %3471 = vmatpush1.bf16.msra.mxu1 %v4710_v24  ;;  %v4736_v24 = vld [vmem:[%s5641_s4 + $0x114] ss:$8 sps:$4 sm:$0xff]  }
 0xada   : > { %3472 = vmatprep.subr.bf16.mxu1 %v4715_v26 }
 0xadd   : > { %3473 = vmatpush1.bf16.msra.mxu1 %v4713_v34 }
 0xade   : > { %3474 = vmatprep.subr.bf16.mxu1 %v4718_v38 }
 0xae1   : > { %3475 = vmatpush1.bf16.msra.mxu1 %v4716_v39 }
 0xae2   : > { %3476 = vmatprep.subr.bf16.mxu1 %v4721_v20 }
 0xae5   : > { %3477 = vmatpush1.bf16.msra.mxu1 %v4719_v22 }
 0xae6   : > { %3478 = vmatprep.subr.bf16.mxu1 %v4724_v50 }
 0xae9   : > { %3479 = vmatpush1.bf16.msra.mxu1 %v4722_v40 }
 0xaea   : > { %3480 = vmatprep.subr.bf16.mxu1 %v4727_v41 }
 0xaed   : > { %3481 = vmatpush1.bf16.msra.mxu1 %v4725_v42 }
 0xaee   : > { %3482 = vmatprep.subr.bf16.mxu1 %v4730_v47  ;;  %v4734_v47 = vld [vmem:[%s5641_s4 + $0x110] ss:$8 sps:$4 sm:$0xff]  }
 0xaf1   : > { %3483 = vmatpush1.bf16.msra.mxu1 %v4728_v48 }
 0xaf2   : > { %3505 = vmatprep.subr.bf16.mxu1 %v4733_v43 }
 0xb87   : > { %v2960_v62 = vpop.f32.mrb[32].mxu1  ;;  %v3013_v0 = vpop.f32.mrb[32].mxu0 }
 0xb88   : > { %v2961_v55 = vadd.f32 %v2960_v62, %v2589_v57  ;;  %v3014_v56 = vadd.f32 %v3013_v0, %v2597_v35  ;;  %v2962_v9 = vpop.f32.mrb[33].mxu1  ;;  %v3015_v14 = vpop.f32.mrb[33].mxu0  ;;  %v4739_v0 = vld [vmem:[%s5641_s4 + $0x124] ss:$8 sps:$4 sm:$0xff]  }
 0xb89   : > { %v2963_v16 = vadd.f32 %v2962_v9, %v2593_v53  ;;  %v3016_v1 = vadd.f32 %v3015_v14, %v2601_v33  ;;  %v2964_v25 = vpop.f32.mrb[34].mxu1  ;;  %v3017_v21 = vpop.f32.mrb[34].mxu0 }
 0xb8a   : > { %v2965_v19 = vadd.f32 %v2964_v25, %v2589_v57  ;;  %v3018_v49 = vadd.f32 %v3017_v21, %v2597_v35  ;;  %v2966_v52 = vpop.f32.mrb[35].mxu1  ;;  %v3019_v44 = vpop.f32.mrb[35].mxu0  ;;  %v3032_v28 = vmax.f32 %v2961_v55, 0.0  ;;  %v3034_v27 = vmax.f32 %v3014_v56, 0.0  ;;  %v4740_v25 = vld [vmem:[%s5641_s4 + $0x130] ss:$8 sps:$4 sm:$0xff]  }
 0xb8b   : > { %v2967_v36 = vadd.f32 %v2966_v52, %v2593_v53  ;;  %v3020_v60 = vadd.f32 %v3019_v44, %v2601_v33  ;;  %v3033_v18 = vmax.f32 %v2963_v16, 0.0  ;;  %v3035_v4 = vmax.f32 %v3016_v1, 0.0  ;;  %v4737_v16 = vld [vmem:[%s5641_s4 + $0x120] ss:$8 sps:$4 sm:$0xff]   ;;  %v4742_v1 = vld [vmem:[%s5641_s4 + $0x134] ss:$8 sps:$4 sm:$0xff]  }
 0xb8c   : > { %v3036_v37 = vmax.f32 %v2965_v19, 0.0  ;;  %v3038_v2 = vmax.f32 %v3018_v49, 0.0  ;;  %v4745_v21 = vld [vmem:[%s5641_s4 + $0x144] ss:$8 sps:$4 sm:$0xff]   ;;  %v4743_v19 = vld [vmem:[%s5641_s4 + $0x140] ss:$8 sps:$4 sm:$0xff]  }
 0xb8d   : > { %v3037_v5 = vmax.f32 %v2967_v36, 0.0  ;;  %v3039_v59 = vmax.f32 %v3020_v60, 0.0  ;;  %v4748_v49 = vld [vmem:[%s5641_s4 + $0x154] ss:$8 sps:$4 sm:$0xff]   ;;  %v4746_v52 = vld [vmem:[%s5641_s4 + $0x150] ss:$8 sps:$4 sm:$0xff]  }
 0xb8e   : > { %v3048_v58 = vpack.c.bf16 %v3036_v37, %v3032_v28  ;;  %v6292_v6 = vpack.c.bf16 %v3038_v2, %v3034_v27  ;;  %v4751_v44 = vld [vmem:[%s5641_s4 + $0x164] ss:$8 sps:$4 sm:$0xff]   ;;  %v4749_v36 = vld [vmem:[%s5641_s4 + $0x160] ss:$8 sps:$4 sm:$0xff]   ;;  %v4754_v60 = vld [vmem:[%s5641_s4 + $0x174] ss:$8 sps:$4 sm:$0xff]  }
 0xb8f   : > { %v3049_v7 = vpack.c.bf16 %v3037_v5, %v3033_v18  ;;  %v3051_v10 = vpack.c.bf16 %v3039_v59, %v3035_v4  ;;  %v2970_v13 = vpop.f32.mrb[36].mxu1  ;;  %v3023_v15 = vpop.f32.mrb[36].mxu0  ;;  %v4752_v28 = vld [vmem:[%s5641_s4 + $0x170] ss:$8 sps:$4 sm:$0xff]   ;;  %v4757_v27 = vld [vmem:[%s5641_s4 + $0x184] ss:$8 sps:$4 sm:$0xff]  }
 0xb90   : > { %v2971_v17 = vadd.f32 %v2970_v13, %v2589_v57  ;;  %v3024_v45 = vadd.f32 %v3023_v15, %v2597_v35  ;;  %v2972_v23 = vpop.f32.mrb[37].mxu1  ;;  %v3025_v12 = vpop.f32.mrb[37].mxu0  ;;  %v4755_v37 = vld [vmem:[%s5641_s4 + $0x180] ss:$8 sps:$4 sm:$0xff]   ;;  %v4760_v2 = vld [vmem:[%s5641_s4 + $0x194] ss:$8 sps:$4 sm:$0xff]  }
 0xb91   : > { %v2973_v26 = vadd.f32 %v2972_v23, %v2593_v53  ;;  %v3026_v34 = vadd.f32 %v3025_v12, %v2601_v33  ;;  %v2974_v38 = vpop.f32.mrb[38].mxu1  ;;  %v3027_v39 = vpop.f32.mrb[38].mxu0  ;;  %3484 = vmatprep.mubr.bf16.mxu1 %v3049_v7  ;;  %v4758_v18 = vld [vmem:[%s5641_s4 + $0x190] ss:$8 sps:$4 sm:$0xff]   ;;  %v4763_v4 = vld [vmem:[%s5641_s4 + $0x1a4] ss:$8 sps:$4 sm:$0xff]  }
 0xb92   : > { %v2975_v20 = vadd.f32 %v2974_v38, %v2589_v57  ;;  %v3028_v22 = vadd.f32 %v3027_v39, %v2597_v35  ;;  %v2976_v50 = vpop.f32.mrb[39].mxu1  ;;  %v3029_v40 = vpop.f32.mrb[39].mxu0  ;;  %3485 = vmatmul.mubr.bf16.vlgmr.msra.gmra.mrb[40].mxu1 %v3048_v58  ;;  %v3040_v48 = vmax.f32 %v2971_v17, 0.0  ;;  %v3042_v43 = vmax.f32 %v3024_v45, 0.0  ;;  %v4761_v5 = vld [vmem:[%s5641_s4 + $0x1a0] ss:$8 sps:$4 sm:$0xff]  }
 0xb93   : > { %v2977_v41 = vadd.f32 %v2976_v50, %v2593_v53  ;;  %v3030_v42 = vadd.f32 %v3029_v40, %v2601_v33  ;;  %3506 = vmatpush1.bf16.msra.mxu1 %v4731_v29  ;;  %v3041_v55 = vmax.f32 %v2973_v26, 0.0  ;;  %v3043_v56 = vmax.f32 %v3026_v34, 0.0  ;;  %v4766_v59 = vld [vmem:[%s5641_s4 + $0x1b4] ss:$8 sps:$4 sm:$0xff]   ;;  %v4764_v58 = vld [vmem:[%s5641_s4 + $0x1b0] ss:$8 sps:$4 sm:$0xff]  }
 0xb94   : > { %v3044_v30 = vmax.f32 %v2975_v20, 0.0  ;;  %v3046_v62 = vmax.f32 %v3028_v22, 0.0  ;;  %3507 = vmatprep.subr.bf16.mxu1 %v4736_v24  ;;  %v4769_v7 = vld [vmem:[%s5641_s4 + $0x1c4] ss:$8 sps:$4 sm:$0xff]   ;;  %v4772_v13 = vld [vmem:[%s5641_s4 + $0x1d4] ss:$8 sps:$4 sm:$0xff]  }
 0xb95   : > { %v3045_v57 = vmax.f32 %v2977_v41, 0.0  ;;  %v3047_v35 = vmax.f32 %v3030_v42, 0.0  ;;  %v4770_v15 = vld [vmem:[%s5641_s4 + $0x1d0] ss:$8 sps:$4 sm:$0xff]   ;;  %v4775_v29 = vld [vmem:[%s5641_s4 + $0x1e4] ss:$8 sps:$4 sm:$0xff]  }
 0xb96   : > { %v3052_v9 = vpack.c.bf16 %v3044_v30, %v3040_v48  ;;  %v6298_v53 = vpack.c.bf16 %v3046_v62, %v3042_v43  ;;  %v4773_v17 = vld [vmem:[%s5641_s4 + $0x1e0] ss:$8 sps:$4 sm:$0xff]   ;;  %v4778_v45 = vld [vmem:[%s5641_s4 + $0x1f4] ss:$8 sps:$4 sm:$0xff]   ;;  %v4776_v23 = vld [vmem:[%s5641_s4 + $0x1f0] ss:$8 sps:$4 sm:$0xff]  }
 0xb97   : > { %v3053_v33 = vpack.c.bf16 %v3045_v57, %v3041_v55  ;;  %v3055_v14 = vpack.c.bf16 %v3047_v35, %v3043_v56  ;;  %3508 = vmatpush1.bf16.msra.mxu1 %v4734_v47  ;;  %v3120_v12 = vld [vmem:[%s767_s6] sm:$0x3]  ;;  %s3589_s6 = sshll.u32 %s5682_s10, 4  ;;  %s6355_s6 = int_to_ptr.vmem [resolvable:$true] %s3589_s6 }
 0xb98   : > { %3509 = vmatprep.subr.bf16.mxu1 %v4739_v0  ;;  %v3125_v24 = vrot.slane %v3120_v12, %v5796_v32  ;;  %v3129_v26 = vrot.slane %v3120_v12, %v5793_v31  ;;  %s5015_s7 = scalar_lea.vmem %s6355_s6, 1024  ;;  %p5022_p11 = scmp.lt.s32.totalorder %s6355_s6, %s5020_s16 }
 0xb99   : > { %3494 = vmatprep.mubr.bf16.mxu1 %v3053_v33  ;;  %p5016_p6 = scmp.ne.s32.totalorder %s6355_s6, %s5015_s7  ;;  %p5023_p0 = scmp.lt.s32.totalorder %s5021_s13, %s5015_s7 }
 0xb9a   : > { %3495 = vmatmul.mubr.bf16.gmra.mrb[44].mxu1 %v3052_v9 }
 0xb9b   : > { %3510 = vmatpush1.bf16.msra.mxu1 %v4737_v16  ;;  %3537 = vmatprep.mubr.bf16.mxu1 %v3051_v10  ;;  %v4767_v10 = vld [vmem:[%s5641_s4 + $0x1c0] ss:$8 sps:$4 sm:$0xff]   ;;  %s6541_s4 = sld [smem:[#allocation25_spill]]  ;;  %p5017_p3 = pnand %p5016_p6, %p6545_p1 }
 0xb9c   : > { %3511 = vmatprep.subr.bf16.mxu1 %v4742_v1  ;;  %p5024_p4 = por %p5023_p0, %p5022_p11 }
 0xb9d   : > { %p5018_p13 = pneg %p5017_p3 }
 0xb9f   : > { %3512 = vmatpush1.bf16.msra.mxu1 %v4740_v25  ;;  %p5025_p8 = pnand %p5024_p4, %p5018_p13 }
 0xba0   : > { %3513 = vmatprep.subr.bf16.mxu1 %v4745_v21 }
 0xba1   : > { %s4171_s17 = sshll.u32 %s6541_s4, 10 }
 0xba2   : > { %s6353_s3 = scalar_lea.hbm %s6543_s27, %s4171_s17 }
 0xba3   : > { %3514 = vmatpush1.bf16.msra.mxu1 %v4743_v19 }
 0xba4   : > { %3515 = vmatprep.subr.bf16.mxu1 %v4748_v49 }
 0xba7   : > { %3516 = vmatpush1.bf16.msra.mxu1 %v4746_v52 }
 0xba8   : > { %3517 = vmatprep.subr.bf16.mxu1 %v4751_v44 }
 0xbab   : > { %3518 = vmatpush1.bf16.msra.mxu1 %v4749_v36 }
 0xbac   : > { %3519 = vmatprep.subr.bf16.mxu1 %v4754_v60 }
 0xbaf   : > { %3520 = vmatpush1.bf16.msra.mxu1 %v4752_v28 }
 0xbb0   : > { %3521 = vmatprep.subr.bf16.mxu1 %v4757_v27 }
 0xbb3   : > { %3522 = vmatpush1.bf16.msra.mxu1 %v4755_v37 }
 0xbb4   : > { %3523 = vmatprep.subr.bf16.mxu1 %v4760_v2 }
 0xbb7   : > { %3524 = vmatpush1.bf16.msra.mxu1 %v4758_v18 }
 0xbb8   : > { %3525 = vmatprep.subr.bf16.mxu1 %v4763_v4 }
 0xbbb   : > { %3526 = vmatpush1.bf16.msra.mxu1 %v4761_v5 }
 0xbbc   : > { %3527 = vmatprep.subr.bf16.mxu1 %v4766_v59 }
 0xbbf   : > { %3528 = vmatpush1.bf16.msra.mxu1 %v4764_v58 }
 0xbc0   : > { %3529 = vmatprep.subr.bf16.mxu1 %v4769_v7 }
 0xbc3   : > { %3530 = vmatpush1.bf16.msra.mxu1 %v4767_v10 }
 0xbc4   : > { %3531 = vmatprep.subr.bf16.mxu1 %v4772_v13 }
 0xbc7   : > { %3532 = vmatpush1.bf16.msra.mxu1 %v4770_v15 }
 0xbc8   : > { %3533 = vmatprep.subr.bf16.mxu1 %v4775_v29 }
 0xbcb   : > { %3534 = vmatpush1.bf16.msra.mxu1 %v4773_v17 }
 0xbcc   : > { %3535 = vmatprep.subr.bf16.mxu1 %v4778_v45 }
 0xbcf   : > { %3536 = vmatpush1.bf16.msra.mxu1 %v4776_v23 }
 0xbd2   : > { %3538 = vmatmul.mubr.bf16.vlgmr.msra.gmra.mrb[40].mxu1 %v6292_v6 }
 0xbd3   : > { %3547 = vmatprep.mubr.bf16.mxu1 %v3055_v14 }
 0xbda   : > { %3548 = vmatmul.mubr.bf16.gmra.mrb[44].mxu1 %v6298_v53 }
 0xca5   : > { %v3539_v34 = vpop.f32.mrb[40].mxu1 }
 0xca6   : > { %v4236_v38 = vadd.f32 %v3539_v34, %v3125_v24  ;;  %v3541_v39 = vpop.f32.mrb[41].mxu1 }
 0xca7   : > { %v4237_v6 = vadd.f32 %v3541_v39, %v3129_v26  ;;  %v3543_v20 = vpop.f32.mrb[42].mxu1 }
 0xca8   : > { %v3558_v22 = vadd.f32 %v4236_v38, %v6095_v11  ;;  %v4238_v50 = vadd.f32 %v3543_v20, %v3125_v24  ;;  %v3545_v40 = vpop.f32.mrb[43].mxu1 }
 0xca9   : > { %v3559_v41 = vadd.f32 %v4237_v6, %v6098_v51  ;;  %v4239_v42 = vadd.f32 %v3545_v40, %v3129_v26 }
 0xcaa   : > { %3566 = vst [vmem:[%s5682_s10] sm:$0xff] %v3558_v22  ;;  %v3560_v32 = vadd.f32 %v4238_v50, %v6101_v63 }
 0xcab   : > { %3567 = vst [vmem:[%s5682_s10 + $0x8] sm:$0xff] %v3559_v41  ;;  %v3561_v31 = vadd.f32 %v4239_v42, %v6104_v8 }
 0xcac   : > { %3568 = vst [vmem:[%s5682_s10 + $0x10] sm:$0xff] %v3560_v32 }
 0xcad   : > { %3569 = vst [vmem:[%s5682_s10 + $0x18] sm:$0xff] %v3561_v31  ;;  %v3549_v47 = vpop.f32.mrb[44].mxu1 }
 0xcae   : > { %v4240_v48 = vadd.f32 %v3549_v47, %v3125_v24  ;;  %v3551_v11 = vpop.f32.mrb[45].mxu1 }
 0xcaf   : > { %v4241_v43 = vadd.f32 %v3551_v11, %v3129_v26  ;;  %v3553_v30 = vpop.f32.mrb[46].mxu1 }
 0xcb0   : > { %v3562_v51 = vadd.f32 %v4240_v48, %v6111_v54  ;;  %v4242_v63 = vadd.f32 %v3553_v30, %v3125_v24  ;;  %v3555_v62 = vpop.f32.mrb[47].mxu1 }
 0xcb1   : > { %v3563_v8 = vadd.f32 %v4241_v43, %v6114_v61  ;;  %v4243_v0 = vadd.f32 %v3555_v62, %v3129_v26 }
 0xcb2   : > { %3570 = vst [vmem:[%s5682_s10 + $0x20] sm:$0xff] %v3562_v51  ;;  %v3564_v55 = vadd.f32 %v4242_v63, %v6117_v46 }
 0xcb3   : > { %3571 = vst [vmem:[%s5682_s10 + $0x28] sm:$0xff] %v3563_v8  ;;  %v3565_v54 = vadd.f32 %v4243_v0, %v6120_v3 }
 0xcb4   : > { %3572 = vst [vmem:[%s5682_s10 + $0x30] sm:$0xff] %v3564_v55 }
 0xcb5   : > { %3573 = vst [vmem:[%s5682_s10 + $0x38] sm:$0xff] %v3565_v54 }
 0xcb6   : > { %5028 = shalt.err (!%p5025_p8)
}
 0xcb7   : > { %s5029_s10 = scalar_lea.hbm %s6353_s3, 1024  ;;  %s5033_s29 = scalar_lea.hbm %s6544_s11, 2048 }
 0xcb8   : > { %p5030_p2 = scmp.ne.s32.totalorder %s6353_s3, %s5029_s10  ;;  %p5034_p9 = scmp.lt.u32.totalorder %s6353_s3, %s6544_s11 }
 0xcb9   : > { %p5035_p5 = scmp.lt.u32.totalorder %s5033_s29, %s5029_s10  ;;  %p5037_p6 = scmp.lt.u32.totalorder %s5029_s10, %s6353_s3 }
 0xcba   : > { %p5031_p7 = pnand %p5030_p2, %p6545_p1 }
 0xcbb   : > { %p5036_p12 = por %p5035_p5, %p5034_p9 }
 0xcbc   : > { %p5032_p10 = pneg %p5031_p7 }
 0xcbd   : > { %p5038_p3 = por %p5037_p6, %p5036_p12 }
 0xcbf   : > { %p5039_p13 = pnand %p5038_p3, %p5032_p10 }
 0xcc1   : > { %5042 = shalt.err (!%p5039_p13)
}
 0xcc2   : > { %s5166_s25 = smov 256   ;;  %s5167_s28 = smov 16  }
 0xcc3   : > { %4270 = dma.vmem_to_hbm [thread:$0]  (%p6545_p1), %s6355_s6, 1024, %s6353_s3, %s3575_s2, %s5166_s25, %s5166_s25, %s5167_s28  }
 0xcc4 PF: > { %s6546_s22 = sld [smem:[#allocation28_spill]]  ;;  %s6547_s21 = sld [smem:[#allocation21_spill]] }
 0xcc5   : > { %s6548_s12 = sld [smem:[#allocation35_spill]] }
 0xcca   : > { %p4296_p11 = scmp.ge.s32.totalorder %s6546_s22, 2  ;;  %s3604_s20 = sand.u32 1, %s6547_s21  }
 0xccb   : > { %p6549_p0 = scmp.ne.s32.totalorder %s6548_s12, 0  ;;  %s3605_s1 = scalar_lea.sflag [#allocation4], %s3604_s20 }
 0xccd   : > { %p4292_p4 = pnand %p4296_p11, %p6549_p0 }
 0xccf   : > { %5104 = dma.done.wait (!%p4292_p4), %s3605_s1, 1024  }
 0xcd0   : > { %5106 = vsyncadd (!%p4292_p4), %s3605_s1, 4294966272  ;;  %s38_s18 = sadd.s32 1, %s6546_s22   ;;  %s6550_s25 = sld [smem:[#allocation19_spill]] }
 0xcd1   : > { %p35_p8 = scmp.ge.s32.totalorder %s38_s18, 6   ;;  %s6551_s26 = sld [smem:[#allocation20_spill]] }
 0xcd2   : > { %s6552_s27 = sld [smem:[#allocation32_spill]]  ;;  %s6553_s28 = sld [smem:[#allocation22_spill]] }
 0xcd3   : > { %s6554_s29 = sld [smem:[#allocation23_spill]]  ;;  %s6555_s30 = sld [smem:[#allocation33_spill]] }
 0xcd4   : > { %s6556_s14 = sld [smem:[#allocation26_spill]]  ;;  %s6557_s15 = sld [smem:[#allocation27_spill]] }
 0xcd5   : > { %s6558_s16 = sld [smem:[#allocation29_spill]]  ;;  %s6559_s17 = sld [smem:[#allocation31_spill]] }
 0xcd6   :  { %37 = sbr.rel (!%p35_p8) target bundleno = 30 (0x1e), region = 203 }
 0xcdd   :  { %3610 = vsyncpa [#allocation3], 1 }
 0xcde   :  { %3612 = vsyncpa [#allocation3 + $0x1], 1 }
 0xcdf   :  { %3613 = vsyncpa [#allocation6], 1 }
 0xce0   :  { %3615 = vsyncpa [#allocation6 + $0x1], 1 }
 0xce1   :  { %3616 = vsyncpa [#allocation9], 1 }
 0xce2   :  { %3618 = vsyncpa [#allocation9 + $0x1], 1 }
 0xce3   :  { %3619 = vsyncpa [#allocation12], 1 }
 0xce4   :  { %3621 = vsyncpa [#allocation12 + $0x1], 1 }
 0xce5   :  { %3622 = vsyncpa [#allocation4], 1 }
 0xce6   :  { %3624 = vsyncpa [#allocation4 + $0x1], 1 }

</bundles_post_ra>
